<compile_context>
chip_gen: v7x
topology: tpu7x:2x2x1
jax: 0.10.0
libtpu: 0.0.40
codegen_flags: <defaults>
</compile_context>

<pallas_src>
import math
from functools import partial

import jax
import jax.numpy as jnp
from jax.experimental import pallas as pl
from jax.experimental.pallas import tpu as pltpu


# ----------------------------------------------------------------------------- #
# small in-kernel helpers
# ----------------------------------------------------------------------------- #
def _mm(a, w_bf16):
    # x @ w with weights pre-transposed to (in, out) and stored in bf16;
    # activations cast to bf16, f32 accumulation on the MXU.
    return jnp.dot(a.astype(jnp.bfloat16), w_bf16, preferred_element_type=jnp.float32)


def _layer_norm(x, g, b, eps=1e-5):
    mu = jnp.mean(x, axis=-1, keepdims=True)
    var = jnp.mean((x - mu) ** 2, axis=-1, keepdims=True)
    return (x - mu) * jax.lax.rsqrt(var + eps) * g + b


# ----------------------------------------------------------------------------- #
# Fused kernel: feature-map + PE -> nlayer encoder layers -> attention pooling.
# One grid step == B_tile batch elements; everything lives in VMEM.
# ----------------------------------------------------------------------------- #
def fused_forward_kernel(x_ref, pe_ref, fmw_ref,
                         wqkv_ref, bqkv_ref, wo_ref, bo_ref,
                         ln1g_ref, ln1b_ref,
                         w1_ref, b1_ref, w2_ref, b2_ref,
                         ln2g_ref, ln2b_ref,
                         a1w_ref, a1b_ref, a2w_ref, a2b_ref,
                         o_ref, *, nlayer, nhead):
    bt, T, Din = x_ref.shape
    d = fmw_ref.shape[1]
    hd = d // nhead
    BT = bt * T
    bf16 = jnp.bfloat16

    # ---- feature mapping + positional encoding (fm bias folded into pe_ref) -----
    x2 = x_ref[...].reshape(BT, Din)                           # (BT, Din)
    h = _mm(x2, fmw_ref[...]) + pe_ref[...]                    # (BT, d) f32

    # ---- nlayer post-LN TransformerEncoderLayers (ReLU FFN, eval mode) ----------
    def layer_body(l, h):
        # fused QKV projection (1/sqrt(hd) pre-folded into the q third)
        qkv = _mm(h, wqkv_ref[l]) + bqkv_ref[l]                # (BT, 3d) f32
        qkv3 = qkv.reshape(bt, T, 3 * d)

        heads = []
        for hi in range(nhead):
            q = qkv3[:, :, hi * hd:(hi + 1) * hd]              # (bt, T, hd)
            k = qkv3[:, :, d + hi * hd:d + (hi + 1) * hd]
            v = qkv3[:, :, 2 * d + hi * hd:2 * d + (hi + 1) * hd]
            # batched q @ k^T, contracting last dims (no explicit K transpose)
            s = jax.lax.dot_general(q.astype(bf16), k.astype(bf16),
                                    (((2,), (2,)), ((0,), (0,))),
                                    preferred_element_type=jnp.float32)  # (bt, T, T)
            s = s - jnp.max(s, axis=-1, keepdims=True)
            p = jnp.exp(s)
            p = p * pl.reciprocal(jnp.sum(p, axis=-1, keepdims=True), approx=True)
            o_h = jax.lax.dot_general(p.astype(bf16), v.astype(bf16),
                                      (((2,), (1,)), ((0,), (0,))),
                                      preferred_element_type=jnp.float32)  # (bt, T, hd)
            heads.append(o_h)

        attn = jnp.concatenate(heads, axis=-1).reshape(BT, d)  # concat heads on lanes
        attn = _mm(attn, wo_ref[l]) + bo_ref[l]                # fused out-projection
        h = _layer_norm(h + attn, ln1g_ref[l], ln1b_ref[l])

        f = jnp.maximum(_mm(h, w1_ref[l]) + b1_ref[l], 0.0)    # (BT, dff)
        f = _mm(f, w2_ref[l]) + b2_ref[l]                      # (BT, d)
        h = _layer_norm(h + f, ln2g_ref[l], ln2b_ref[l])
        return h

    h = jax.lax.fori_loop(0, nlayer, layer_body, h)

    # ---- 'self-attention' reduce: att1 -> tanh -> att2 -> softmax over T --------
    a1 = jnp.tanh(_mm(h, a1w_ref[...]) + a1b_ref[...])         # (BT, d)
    a2 = _mm(a1, a2w_ref[...]) + a2b_ref[...]                  # (BT, 1)
    a2 = a2.reshape(bt, T, 1)
    # Per-batch max subtraction; softmax is shift-invariant, so this equals the
    # module's global-max version up to the +1e-15 denominator epsilon.
    a2 = a2 - jnp.max(a2, axis=1, keepdims=True)
    e = jnp.exp(a2)
    alpha = e * pl.reciprocal(jnp.sum(e, axis=1, keepdims=True) + 1e-15, approx=True)
    pooled = jnp.sum(alpha * h.reshape(bt, T, d), axis=1)      # (bt, d)
    o_ref[...] = pooled.reshape(bt, 1, d)


# ----------------------------------------------------------------------------- #
# host-side weight preparation: transpose to (in, out), fuse QKV, fold scale,
# cast matmul weights to bf16 (biases / LN params stay f32)
# ----------------------------------------------------------------------------- #
def prepare_kernel_params(params, nhead, nlayer, T, b_tile):
    d = params["fm_w"].shape[0]
    hd = d // nhead
    scale = 1.0 / math.sqrt(hd)
    bf16, f32 = jnp.bfloat16, jnp.float32

    # 1/sqrt(hd) folded into the q third of the fused QKV weight and bias
    qscale = jnp.concatenate([jnp.full((d,), scale, f32), jnp.ones((2 * d,), f32)])

    wqkv, bqkv, wo, bo = [], [], [], []
    ln1g, ln1b, w1, b1, w2, b2, ln2g, ln2b = ([] for _ in range(8))
    for l in range(nlayer):
        p = params["layers"][l]
        wqkv.append((p["in_w"].T * qscale[None, :]).astype(bf16))   # (d, 3d)
        bqkv.append((p["in_b"][0] * qscale).reshape(1, 3 * d))      # (1, 3d) f32
        wo.append(p["out_w"].T.astype(bf16))                        # (d, d)
        bo.append(p["out_b"])                                       # (1, d) f32
        ln1g.append(p["ln1_g"]); ln1b.append(p["ln1_b"])
        w1.append(p["ff1_w"].T.astype(bf16)); b1.append(p["ff1_b"])
        w2.append(p["ff2_w"].T.astype(bf16)); b2.append(p["ff2_b"])
        ln2g.append(p["ln2_g"]); ln2b.append(p["ln2_b"])

    pe_b = params["pe"][:T] + params["fm_b"]                        # (T, d), fm bias folded
    return dict(
        pe_bt=jnp.tile(pe_b, (b_tile, 1)),                          # (b_tile*T, d) f32
        fm_w=params["fm_w"].T.astype(bf16),                         # (Din, d)
        wqkv=jnp.stack(wqkv), bqkv=jnp.stack(bqkv),
        wo=jnp.stack(wo), bo=jnp.stack(bo),
        ln1g=jnp.stack(ln1g), ln1b=jnp.stack(ln1b),
        w1=jnp.stack(w1), b1=jnp.stack(b1),
        w2=jnp.stack(w2), b2=jnp.stack(b2),
        ln2g=jnp.stack(ln2g), ln2b=jnp.stack(ln2b),
        a1w=params["att1_w"].T.astype(bf16), a1b=params["att1_b"],
        a2w=params["att2_w"].T.astype(bf16), a2b=params["att2_b"],
    )


def _const_spec(a):
    nd = a.ndim
    return pl.BlockSpec(a.shape, lambda i, _nd=nd: (0,) * _nd)


def _pick_batch_tile(B, T, max_rows=1024):
    # largest divisor of B such that B_tile*T rows of activations stay modest
    bt = 1
    for cand in range(1, B + 1):
        if B % cand == 0 and cand * T <= max_rows:
            bt = cand
    return bt


def transformer_encoder_forward(x, params, nhead, nlayer):
    # x: (B, T, Din) — the tensor the PyTorch module receives before its transpose.
    B, T, Din = x.shape
    d = params["fm_w"].shape[0]
    b_tile = _pick_batch_tile(B, T)
    kp = prepare_kernel_params(params, nhead, nlayer, T, b_tile)

    weight_args = (kp["pe_bt"], kp["fm_w"],
                   kp["wqkv"], kp["bqkv"], kp["wo"], kp["bo"],
                   kp["ln1g"], kp["ln1b"],
                   kp["w1"], kp["b1"], kp["w2"], kp["b2"],
                   kp["ln2g"], kp["ln2b"],
                   kp["a1w"], kp["a1b"], kp["a2w"], kp["a2b"])

    out = pl.pallas_call(
        partial(fused_forward_kernel, nlayer=nlayer, nhead=nhead),
        out_shape=jax.ShapeDtypeStruct((B, 1, d), jnp.float32),
        grid=(B // b_tile,),
        in_specs=[pl.BlockSpec((b_tile, T, Din), lambda i: (i, 0, 0))]
                 + [_const_spec(a) for a in weight_args],
        out_specs=pl.BlockSpec((b_tile, 1, d), lambda i: (i, 0, 0)),
        compiler_params=pltpu.CompilerParams(
            dimension_semantics=("parallel",),
            vmem_limit_bytes=64 * 1024 * 1024),
    )(x, *weight_args)
    return out[:, 0, :]                                             # (B, d)


# ----------------------------------------------------------------------------- #
# parameter construction (deterministic, synthetic, PyTorch weight layout)
# ----------------------------------------------------------------------------- #
def sinusoidal_pe(T, d):
    pos = jnp.arange(T, dtype=jnp.float32)[:, None]
    div = jnp.exp(jnp.arange(0, d, 2, dtype=jnp.float32) * (-math.log(10000.0) / d))
    pe = jnp.zeros((T, d), dtype=jnp.float32)
    pe = pe.at[:, 0::2].set(jnp.sin(pos * div))
    pe = pe.at[:, 1::2].set(jnp.cos(pos * div))
    return pe


def init_params(key, din, d_model, dff, nlayer, max_len):
    def nrm(k, shape, scale=0.1):
        return scale * jax.random.normal(k, shape, dtype=jnp.float32)

    n_keys = 6 + 8 * nlayer
    keys = iter(jax.random.split(key, n_keys))
    params = {
        "fm_w": nrm(next(keys), (d_model, din)),
        "fm_b": nrm(next(keys), (1, d_model)),
        "pe": sinusoidal_pe(max_len, d_model),
        "att1_w": nrm(next(keys), (d_model, d_model)),
        "att1_b": nrm(next(keys), (1, d_model)),
        "att2_w": nrm(next(keys), (1, d_model)),
        "att2_b": nrm(next(keys), (1, 1)),
        "layers": [],
    }
    for _ in range(nlayer):
        params["layers"].append({
            "in_w": nrm(next(keys), (3 * d_model, d_model)),
            "in_b": nrm(next(keys), (1, 3 * d_model)),
            "out_w": nrm(next(keys), (d_model, d_model)),
            "out_b": nrm(next(keys), (1, d_model)),
            "ln1_g": jnp.ones((1, d_model), jnp.float32),
            "ln1_b": jnp.zeros((1, d_model), jnp.float32),
            "ff1_w": nrm(next(keys), (dff, d_model)),
            "ff1_b": nrm(next(keys), (1, dff)),
            "ff2_w": nrm(next(keys), (d_model, dff)),
            "ff2_b": nrm(next(keys), (1, d_model)),
            "ln2_g": jnp.ones((1, d_model), jnp.float32),
            "ln2_b": jnp.zeros((1, d_model), jnp.float32),
        })
    return params


# ----------------------------------------------------------------------------- #
# pure-JAX reference (PyTorch semantics, f32; used for a sanity check)
# ----------------------------------------------------------------------------- #
def _ln_ref(x, g, b, eps=1e-5):
    mu = jnp.mean(x, -1, keepdims=True)
    var = jnp.mean((x - mu) ** 2, -1, keepdims=True)
    return (x - mu) / jnp.sqrt(var + eps) * g + b


def reference_forward(x, params, nhead, nlayer):
    B, T, _ = x.shape
    d = params["fm_w"].shape[0]
    hd = d // nhead
    h = (jnp.einsum('bti,mi->btm', x, params["fm_w"]) + params["fm_b"][0]
         + params["pe"][:T][None])
    for l in range(nlayer):
        p = params["layers"][l]
        qkv = jnp.einsum('btd,ed->bte', h, p["in_w"]) + p["in_b"][0]
        q, k, v = qkv[..., :d], qkv[..., d:2 * d], qkv[..., 2 * d:]
        q = q.reshape(B, T, nhead, hd)
        k = k.reshape(B, T, nhead, hd)
        v = v.reshape(B, T, nhead, hd)
        s = jnp.einsum('bqhd,bkhd->bhqk', q, k) / math.sqrt(hd)
        pa = jax.nn.softmax(s, axis=-1)
        a = jnp.einsum('bhqk,bkhd->bqhd', pa, v).reshape(B, T, d)
        a = jnp.einsum('btd,ed->bte', a, p["out_w"]) + p["out_b"][0]
        h = _ln_ref(h + a, p["ln1_g"][0], p["ln1_b"][0])
        f = jax.nn.relu(jnp.einsum('btd,ed->bte', h, p["ff1_w"]) + p["ff1_b"][0])
        f = jnp.einsum('bte,de->btd', f, p["ff2_w"]) + p["ff2_b"][0]
        h = _ln_ref(h + f, p["ln2_g"][0], p["ln2_b"][0])
    a1 = jnp.tanh(jnp.einsum('btd,ed->bte', h, params["att1_w"]) + params["att1_b"][0])
    a2 = jnp.einsum('bte,oe->bto', a1, params["att2_w"])[..., 0] + params["att2_b"][0, 0]
    a2 = a2 - jnp.max(a2)                                      # global max (as in module)
    e = jnp.exp(a2)
    alpha = e / (jnp.sum(e, axis=1, keepdims=True) + 1e-15)
    return jnp.sum(alpha[:, :, None] * h, axis=1)


# ----------------------------------------------------------------------------- #
if __name__ == "__main__":
    B, T, Din = 2, 8, 16
    nhead, d_model, dff, nlayer = 4, 32, 64, 2
    max_len = 16                                               # > T; PE sliced to T

    key = jax.random.PRNGKey(0)
    kx, kparam = jax.random.split(key)
    x = jax.random.normal(kx, (B, T, Din), dtype=jnp.float32)
    params = init_params(kparam, Din, d_model, dff, nlayer, max_len=max_len)

    out = transformer_encoder_forward(x, params, nhead, nlayer)
    out = jax.block_until_ready(out)
    assert out.shape == (B, d_model)

    ref = reference_forward(x, params, nhead, nlayer)
    # bf16 matmul operands (f32 accumulation) -> slightly looser tolerance than f32.
    if not jnp.allclose(out, ref, rtol=2e-2, atol=2e-2):
        err = float(jnp.max(jnp.abs(out - ref)))
        raise AssertionError(f"Pallas kernel mismatch vs reference (max abs err {err})")

    print("KERNEL_OK")
</pallas_src>

<mosaic_0001>
module attributes {stable_mosaic.version = 11 : i64} {
  func.func @fused_forward_kernel(%arg0: i32, %arg1: memref<2x8x16xf32, #tpu.memory_space<vmem>>, %arg2: memref<16x32xf32, #tpu.memory_space<vmem>>, %arg3: memref<16x32xbf16, #tpu.memory_space<vmem>>, %arg4: memref<2x32x96xbf16, #tpu.memory_space<vmem>>, %arg5: memref<2x1x96xf32, #tpu.memory_space<vmem>>, %arg6: memref<2x32x32xbf16, #tpu.memory_space<vmem>>, %arg7: memref<2x1x32xf32, #tpu.memory_space<vmem>>, %arg8: memref<2x1x32xf32, #tpu.memory_space<vmem>>, %arg9: memref<2x1x32xf32, #tpu.memory_space<vmem>>, %arg10: memref<2x32x64xbf16, #tpu.memory_space<vmem>>, %arg11: memref<2x1x64xf32, #tpu.memory_space<vmem>>, %arg12: memref<2x64x32xbf16, #tpu.memory_space<vmem>>, %arg13: memref<2x1x32xf32, #tpu.memory_space<vmem>>, %arg14: memref<2x1x32xf32, #tpu.memory_space<vmem>>, %arg15: memref<2x1x32xf32, #tpu.memory_space<vmem>>, %arg16: memref<32x32xbf16, #tpu.memory_space<vmem>>, %arg17: memref<1x32xf32, #tpu.memory_space<vmem>>, %arg18: memref<32x1xbf16, #tpu.memory_space<vmem>>, %arg19: memref<1x1xf32, #tpu.memory_space<vmem>>, %arg20: memref<2x1x32xf32, #tpu.memory_space<vmem>>) attributes {dimension_semantics = [#tpu.dimension_semantics<parallel>], iteration_bounds = array<i64: 1>, scalar_prefetch = 0 : i64, scratch_operands = 0 : i64, tpu.core_type = #tpu.core_type<tc>, window_params = [{transform_indices = @transform_0, window_bounds = array<i64: 2, 8, 16>}, {pipeline_mode = #tpu.pipeline_mode<synchronous>, transform_indices = @transform_1, window_bounds = array<i64: 16, 32>}, {pipeline_mode = #tpu.pipeline_mode<synchronous>, transform_indices = @transform_2, window_bounds = array<i64: 16, 32>}, {pipeline_mode = #tpu.pipeline_mode<synchronous>, transform_indices = @transform_3, window_bounds = array<i64: 2, 32, 96>}, {pipeline_mode = #tpu.pipeline_mode<synchronous>, transform_indices = @transform_4, window_bounds = array<i64: 2, 1, 96>}, {pipeline_mode = #tpu.pipeline_mode<synchronous>, transform_indices = @transform_5, window_bounds = array<i64: 2, 32, 32>}, {pipeline_mode = #tpu.pipeline_mode<synchronous>, transform_indices = @transform_6, window_bounds = array<i64: 2, 1, 32>}, {pipeline_mode = #tpu.pipeline_mode<synchronous>, transform_indices = @transform_7, window_bounds = array<i64: 2, 1, 32>}, {pipeline_mode = #tpu.pipeline_mode<synchronous>, transform_indices = @transform_8, window_bounds = array<i64: 2, 1, 32>}, {pipeline_mode = #tpu.pipeline_mode<synchronous>, transform_indices = @transform_9, window_bounds = array<i64: 2, 32, 64>}, {pipeline_mode = #tpu.pipeline_mode<synchronous>, transform_indices = @transform_10, window_bounds = array<i64: 2, 1, 64>}, {pipeline_mode = #tpu.pipeline_mode<synchronous>, transform_indices = @transform_11, window_bounds = array<i64: 2, 64, 32>}, {pipeline_mode = #tpu.pipeline_mode<synchronous>, transform_indices = @transform_12, window_bounds = array<i64: 2, 1, 32>}, {pipeline_mode = #tpu.pipeline_mode<synchronous>, transform_indices = @transform_13, window_bounds = array<i64: 2, 1, 32>}, {pipeline_mode = #tpu.pipeline_mode<synchronous>, transform_indices = @transform_14, window_bounds = array<i64: 2, 1, 32>}, {pipeline_mode = #tpu.pipeline_mode<synchronous>, transform_indices = @transform_15, window_bounds = array<i64: 32, 32>}, {pipeline_mode = #tpu.pipeline_mode<synchronous>, transform_indices = @transform_16, window_bounds = array<i64: 1, 32>}, {pipeline_mode = #tpu.pipeline_mode<synchronous>, transform_indices = @transform_17, window_bounds = array<i64: 32, 1>}, {pipeline_mode = #tpu.pipeline_mode<synchronous>, transform_indices = @transform_18, window_bounds = array<i64: 1, 1>}, {transform_indices = @transform_19, window_bounds = array<i64: 2, 1, 32>}]} {
    %c0 = arith.constant 0 : index
    %c0_0 = arith.constant 0 : index
    %c0_1 = arith.constant 0 : index
    %0 = vector.load %arg1[%c0, %c0_0, %c0_1] : memref<2x8x16xf32, #tpu.memory_space<vmem>>, vector<2x8x16xf32>
    %1 = vector.shape_cast %0 : vector<2x8x16xf32> to vector<16x16xf32>
    %c0_2 = arith.constant 0 : index
    %c0_3 = arith.constant 0 : index
    %2 = vector.load %arg3[%c0_2, %c0_3] : memref<16x32xbf16, #tpu.memory_space<vmem>>, vector<16x32xbf16>
    %3 = arith.truncf %1 : vector<16x16xf32> to vector<16x16xbf16>
    %cst = arith.constant dense<0.000000e+00> : vector<16x32xf32>
    %4 = tpu.matmul %3, %2, %cst {dimension_numbers = #tpu.dot_dimension_numbers<[1], [0], [0], [1], [0, 0, 1, 1], [], []>} : vector<16x16xbf16>, vector<16x32xbf16>, vector<16x32xf32> -> vector<16x32xf32>
    %c0_4 = arith.constant 0 : index
    %c0_5 = arith.constant 0 : index
    %5 = vector.load %arg2[%c0_4, %c0_5] : memref<16x32xf32, #tpu.memory_space<vmem>>, vector<16x32xf32>
    %6 = arith.addf %4, %5 : vector<16x32xf32>
    %c0_i32 = arith.constant 0 : i32
    %c2_i32 = arith.constant 2 : i32
    %7 = arith.addi %c0_i32, %c2_i32 : i32
    %c1_i32 = arith.constant 1 : i32
    %8 = scf.for %arg21 = %c0_i32 to %7 step %c1_i32 iter_args(%arg22 = %6) -> (vector<16x32xf32>)  : i32 {
      %41 = arith.index_cast %arg21 : i32 to index
      %c0_24 = arith.constant 0 : index
      %c0_25 = arith.constant 0 : index
      %42 = vector.load %arg4[%41, %c0_24, %c0_25] : memref<2x32x96xbf16, #tpu.memory_space<vmem>>, vector<1x32x96xbf16>
      %43 = vector.shape_cast %42 : vector<1x32x96xbf16> to vector<32x96xbf16>
      %44 = arith.truncf %arg22 : vector<16x32xf32> to vector<16x32xbf16>
      %cst_26 = arith.constant dense<0.000000e+00> : vector<16x96xf32>
      %45 = tpu.matmul %44, %43, %cst_26 {dimension_numbers = #tpu.dot_dimension_numbers<[1], [0], [0], [1], [0, 0, 1, 1], [], []>} : vector<16x32xbf16>, vector<32x96xbf16>, vector<16x96xf32> -> vector<16x96xf32>
      %46 = arith.index_cast %arg21 : i32 to index
      %c0_27 = arith.constant 0 : index
      %c0_28 = arith.constant 0 : index
      %47 = vector.load %arg5[%46, %c0_27, %c0_28] : memref<2x1x96xf32, #tpu.memory_space<vmem>>, vector<1x1x96xf32>
      %48 = vector.shape_cast %47 : vector<1x1x96xf32> to vector<1x96xf32>
      %49 = vector.broadcast %48 : vector<1x96xf32> to vector<16x96xf32>
      %50 = arith.addf %45, %49 : vector<16x96xf32>
      %51 = vector.shape_cast %50 : vector<16x96xf32> to vector<2x8x96xf32>
      %52 = vector.extract_strided_slice %51 {offsets = [0, 0, 0], sizes = [2, 8, 8], strides = [1, 1, 1]} : vector<2x8x96xf32> to vector<2x8x8xf32>
      %53 = vector.extract_strided_slice %51 {offsets = [0, 0, 32], sizes = [2, 8, 8], strides = [1, 1, 1]} : vector<2x8x96xf32> to vector<2x8x8xf32>
      %54 = vector.extract_strided_slice %51 {offsets = [0, 0, 64], sizes = [2, 8, 8], strides = [1, 1, 1]} : vector<2x8x96xf32> to vector<2x8x8xf32>
      %55 = arith.truncf %52 : vector<2x8x8xf32> to vector<2x8x8xbf16>
      %56 = arith.truncf %53 : vector<2x8x8xf32> to vector<2x8x8xbf16>
      %cst_29 = arith.constant dense<0.000000e+00> : vector<2x8x8xf32>
      %57 = tpu.matmul %55, %56, %cst_29 {dimension_numbers = #tpu.dot_dimension_numbers<[2], [2], [1], [1], [0, 0, 0, 1, 1, 1], [0], [0]>} : vector<2x8x8xbf16>, vector<2x8x8xbf16>, vector<2x8x8xf32> -> vector<2x8x8xf32>
      %cst_30 = arith.constant dense<0xFF800000> : vector<2x8xf32>
      %58 = vector.multi_reduction <maximumf>, %57, %cst_30 [2] : vector<2x8x8xf32> to vector<2x8xf32>
      %59 = vector.shape_cast %58 : vector<2x8xf32> to vector<2x8x1xf32>
      %60 = vector.broadcast %59 : vector<2x8x1xf32> to vector<2x8x8xf32>
      %61 = arith.subf %57, %60 : vector<2x8x8xf32>
      %62 = math.exp %61 : vector<2x8x8xf32>
      %cst_31 = arith.constant dense<0.000000e+00> : vector<2x8xf32>
      %63 = vector.multi_reduction <add>, %62, %cst_31 [2] : vector<2x8x8xf32> to vector<2x8xf32>
      %64 = vector.shape_cast %63 : vector<2x8xf32> to vector<2x8x1xf32>
      %65 = tpu.reciprocal %64 {approx = true} : vector<2x8x1xf32> -> vector<2x8x1xf32>
      %66 = vector.broadcast %65 : vector<2x8x1xf32> to vector<2x8x8xf32>
      %67 = arith.mulf %62, %66 : vector<2x8x8xf32>
      %68 = arith.truncf %67 : vector<2x8x8xf32> to vector<2x8x8xbf16>
      %69 = arith.truncf %54 : vector<2x8x8xf32> to vector<2x8x8xbf16>
      %cst_32 = arith.constant dense<0.000000e+00> : vector<2x8x8xf32>
      %70 = tpu.matmul %68, %69, %cst_32 {dimension_numbers = #tpu.dot_dimension_numbers<[2], [1], [1], [2], [0, 0, 0, 1, 1, 2], [0], [0]>} : vector<2x8x8xbf16>, vector<2x8x8xbf16>, vector<2x8x8xf32> -> vector<2x8x8xf32>
      %71 = vector.extract_strided_slice %51 {offsets = [0, 0, 8], sizes = [2, 8, 8], strides = [1, 1, 1]} : vector<2x8x96xf32> to vector<2x8x8xf32>
      %72 = vector.extract_strided_slice %51 {offsets = [0, 0, 40], sizes = [2, 8, 8], strides = [1, 1, 1]} : vector<2x8x96xf32> to vector<2x8x8xf32>
      %73 = vector.extract_strided_slice %51 {offsets = [0, 0, 72], sizes = [2, 8, 8], strides = [1, 1, 1]} : vector<2x8x96xf32> to vector<2x8x8xf32>
      %74 = arith.truncf %71 : vector<2x8x8xf32> to vector<2x8x8xbf16>
      %75 = arith.truncf %72 : vector<2x8x8xf32> to vector<2x8x8xbf16>
      %cst_33 = arith.constant dense<0.000000e+00> : vector<2x8x8xf32>
      %76 = tpu.matmul %74, %75, %cst_33 {dimension_numbers = #tpu.dot_dimension_numbers<[2], [2], [1], [1], [0, 0, 0, 1, 1, 1], [0], [0]>} : vector<2x8x8xbf16>, vector<2x8x8xbf16>, vector<2x8x8xf32> -> vector<2x8x8xf32>
      %cst_34 = arith.constant dense<0xFF800000> : vector<2x8xf32>
      %77 = vector.multi_reduction <maximumf>, %76, %cst_34 [2] : vector<2x8x8xf32> to vector<2x8xf32>
      %78 = vector.shape_cast %77 : vector<2x8xf32> to vector<2x8x1xf32>
      %79 = vector.broadcast %78 : vector<2x8x1xf32> to vector<2x8x8xf32>
      %80 = arith.subf %76, %79 : vector<2x8x8xf32>
      %81 = math.exp %80 : vector<2x8x8xf32>
      %cst_35 = arith.constant dense<0.000000e+00> : vector<2x8xf32>
      %82 = vector.multi_reduction <add>, %81, %cst_35 [2] : vector<2x8x8xf32> to vector<2x8xf32>
      %83 = vector.shape_cast %82 : vector<2x8xf32> to vector<2x8x1xf32>
      %84 = tpu.reciprocal %83 {approx = true} : vector<2x8x1xf32> -> vector<2x8x1xf32>
      %85 = vector.broadcast %84 : vector<2x8x1xf32> to vector<2x8x8xf32>
      %86 = arith.mulf %81, %85 : vector<2x8x8xf32>
      %87 = arith.truncf %86 : vector<2x8x8xf32> to vector<2x8x8xbf16>
      %88 = arith.truncf %73 : vector<2x8x8xf32> to vector<2x8x8xbf16>
      %cst_36 = arith.constant dense<0.000000e+00> : vector<2x8x8xf32>
      %89 = tpu.matmul %87, %88, %cst_36 {dimension_numbers = #tpu.dot_dimension_numbers<[2], [1], [1], [2], [0, 0, 0, 1, 1, 2], [0], [0]>} : vector<2x8x8xbf16>, vector<2x8x8xbf16>, vector<2x8x8xf32> -> vector<2x8x8xf32>
      %90 = vector.extract_strided_slice %51 {offsets = [0, 0, 16], sizes = [2, 8, 8], strides = [1, 1, 1]} : vector<2x8x96xf32> to vector<2x8x8xf32>
      %91 = vector.extract_strided_slice %51 {offsets = [0, 0, 48], sizes = [2, 8, 8], strides = [1, 1, 1]} : vector<2x8x96xf32> to vector<2x8x8xf32>
      %92 = vector.extract_strided_slice %51 {offsets = [0, 0, 80], sizes = [2, 8, 8], strides = [1, 1, 1]} : vector<2x8x96xf32> to vector<2x8x8xf32>
      %93 = arith.truncf %90 : vector<2x8x8xf32> to vector<2x8x8xbf16>
      %94 = arith.truncf %91 : vector<2x8x8xf32> to vector<2x8x8xbf16>
      %cst_37 = arith.constant dense<0.000000e+00> : vector<2x8x8xf32>
      %95 = tpu.matmul %93, %94, %cst_37 {dimension_numbers = #tpu.dot_dimension_numbers<[2], [2], [1], [1], [0, 0, 0, 1, 1, 1], [0], [0]>} : vector<2x8x8xbf16>, vector<2x8x8xbf16>, vector<2x8x8xf32> -> vector<2x8x8xf32>
      %cst_38 = arith.constant dense<0xFF800000> : vector<2x8xf32>
      %96 = vector.multi_reduction <maximumf>, %95, %cst_38 [2] : vector<2x8x8xf32> to vector<2x8xf32>
      %97 = vector.shape_cast %96 : vector<2x8xf32> to vector<2x8x1xf32>
      %98 = vector.broadcast %97 : vector<2x8x1xf32> to vector<2x8x8xf32>
      %99 = arith.subf %95, %98 : vector<2x8x8xf32>
      %100 = math.exp %99 : vector<2x8x8xf32>
      %cst_39 = arith.constant dense<0.000000e+00> : vector<2x8xf32>
      %101 = vector.multi_reduction <add>, %100, %cst_39 [2] : vector<2x8x8xf32> to vector<2x8xf32>
      %102 = vector.shape_cast %101 : vector<2x8xf32> to vector<2x8x1xf32>
      %103 = tpu.reciprocal %102 {approx = true} : vector<2x8x1xf32> -> vector<2x8x1xf32>
      %104 = vector.broadcast %103 : vector<2x8x1xf32> to vector<2x8x8xf32>
      %105 = arith.mulf %100, %104 : vector<2x8x8xf32>
      %106 = arith.truncf %105 : vector<2x8x8xf32> to vector<2x8x8xbf16>
      %107 = arith.truncf %92 : vector<2x8x8xf32> to vector<2x8x8xbf16>
      %cst_40 = arith.constant dense<0.000000e+00> : vector<2x8x8xf32>
      %108 = tpu.matmul %106, %107, %cst_40 {dimension_numbers = #tpu.dot_dimension_numbers<[2], [1], [1], [2], [0, 0, 0, 1, 1, 2], [0], [0]>} : vector<2x8x8xbf16>, vector<2x8x8xbf16>, vector<2x8x8xf32> -> vector<2x8x8xf32>
      %109 = vector.extract_strided_slice %51 {offsets = [0, 0, 24], sizes = [2, 8, 8], strides = [1, 1, 1]} : vector<2x8x96xf32> to vector<2x8x8xf32>
      %110 = vector.extract_strided_slice %51 {offsets = [0, 0, 56], sizes = [2, 8, 8], strides = [1, 1, 1]} : vector<2x8x96xf32> to vector<2x8x8xf32>
      %111 = vector.extract_strided_slice %51 {offsets = [0, 0, 88], sizes = [2, 8, 8], strides = [1, 1, 1]} : vector<2x8x96xf32> to vector<2x8x8xf32>
      %112 = arith.truncf %109 : vector<2x8x8xf32> to vector<2x8x8xbf16>
      %113 = arith.truncf %110 : vector<2x8x8xf32> to vector<2x8x8xbf16>
      %cst_41 = arith.constant dense<0.000000e+00> : vector<2x8x8xf32>
      %114 = tpu.matmul %112, %113, %cst_41 {dimension_numbers = #tpu.dot_dimension_numbers<[2], [2], [1], [1], [0, 0, 0, 1, 1, 1], [0], [0]>} : vector<2x8x8xbf16>, vector<2x8x8xbf16>, vector<2x8x8xf32> -> vector<2x8x8xf32>
      %cst_42 = arith.constant dense<0xFF800000> : vector<2x8xf32>
      %115 = vector.multi_reduction <maximumf>, %114, %cst_42 [2] : vector<2x8x8xf32> to vector<2x8xf32>
      %116 = vector.shape_cast %115 : vector<2x8xf32> to vector<2x8x1xf32>
      %117 = vector.broadcast %116 : vector<2x8x1xf32> to vector<2x8x8xf32>
      %118 = arith.subf %114, %117 : vector<2x8x8xf32>
      %119 = math.exp %118 : vector<2x8x8xf32>
      %cst_43 = arith.constant dense<0.000000e+00> : vector<2x8xf32>
      %120 = vector.multi_reduction <add>, %119, %cst_43 [2] : vector<2x8x8xf32> to vector<2x8xf32>
      %121 = vector.shape_cast %120 : vector<2x8xf32> to vector<2x8x1xf32>
      %122 = tpu.reciprocal %121 {approx = true} : vector<2x8x1xf32> -> vector<2x8x1xf32>
      %123 = vector.broadcast %122 : vector<2x8x1xf32> to vector<2x8x8xf32>
      %124 = arith.mulf %119, %123 : vector<2x8x8xf32>
      %125 = arith.truncf %124 : vector<2x8x8xf32> to vector<2x8x8xbf16>
      %126 = arith.truncf %111 : vector<2x8x8xf32> to vector<2x8x8xbf16>
      %cst_44 = arith.constant dense<0.000000e+00> : vector<2x8x8xf32>
      %127 = tpu.matmul %125, %126, %cst_44 {dimension_numbers = #tpu.dot_dimension_numbers<[2], [1], [1], [2], [0, 0, 0, 1, 1, 2], [0], [0]>} : vector<2x8x8xbf16>, vector<2x8x8xbf16>, vector<2x8x8xf32> -> vector<2x8x8xf32>
      %128 = tpu.concatenate %70, %89, %108, %127 in 2 : vector<2x8x8xf32>, vector<2x8x8xf32>, vector<2x8x8xf32>, vector<2x8x8xf32> -> vector<2x8x32xf32>
      %129 = vector.shape_cast %128 : vector<2x8x32xf32> to vector<16x32xf32>
      %130 = arith.index_cast %arg21 : i32 to index
      %c0_45 = arith.constant 0 : index
      %c0_46 = arith.constant 0 : index
      %131 = vector.load %arg6[%130, %c0_45, %c0_46] : memref<2x32x32xbf16, #tpu.memory_space<vmem>>, vector<1x32x32xbf16>
      %132 = vector.shape_cast %131 : vector<1x32x32xbf16> to vector<32x32xbf16>
      %133 = arith.truncf %129 : vector<16x32xf32> to vector<16x32xbf16>
      %cst_47 = arith.constant dense<0.000000e+00> : vector<16x32xf32>
      %134 = tpu.matmul %133, %132, %cst_47 {dimension_numbers = #tpu.dot_dimension_numbers<[1], [0], [0], [1], [0, 0, 1, 1], [], []>} : vector<16x32xbf16>, vector<32x32xbf16>, vector<16x32xf32> -> vector<16x32xf32>
      %135 = arith.index_cast %arg21 : i32 to index
      %c0_48 = arith.constant 0 : index
      %c0_49 = arith.constant 0 : index
      %136 = vector.load %arg7[%135, %c0_48, %c0_49] : memref<2x1x32xf32, #tpu.memory_space<vmem>>, vector<1x1x32xf32>
      %137 = vector.shape_cast %136 : vector<1x1x32xf32> to vector<1x32xf32>
      %138 = vector.broadcast %137 : vector<1x32xf32> to vector<16x32xf32>
      %139 = arith.addf %134, %138 : vector<16x32xf32>
      %140 = arith.addf %arg22, %139 : vector<16x32xf32>
      %141 = arith.index_cast %arg21 : i32 to index
      %c0_50 = arith.constant 0 : index
      %c0_51 = arith.constant 0 : index
      %142 = vector.load %arg8[%141, %c0_50, %c0_51] : memref<2x1x32xf32, #tpu.memory_space<vmem>>, vector<1x1x32xf32>
      %143 = vector.shape_cast %142 : vector<1x1x32xf32> to vector<1x32xf32>
      %144 = arith.index_cast %arg21 : i32 to index
      %c0_52 = arith.constant 0 : index
      %c0_53 = arith.constant 0 : index
      %145 = vector.load %arg9[%144, %c0_52, %c0_53] : memref<2x1x32xf32, #tpu.memory_space<vmem>>, vector<1x1x32xf32>
      %146 = vector.shape_cast %145 : vector<1x1x32xf32> to vector<1x32xf32>
      %cst_54 = arith.constant dense<0.000000e+00> : vector<16xf32>
      %147 = vector.multi_reduction <add>, %140, %cst_54 [1] : vector<16x32xf32> to vector<16xf32>
      %148 = vector.shape_cast %147 : vector<16xf32> to vector<16x1xf32>
      %cst_55 = arith.constant 3.200000e+01 : f32
      %149 = vector.broadcast %cst_55 : f32 to vector<16x1xf32>
      %150 = arith.divf %148, %149 : vector<16x1xf32>
      %151 = vector.broadcast %150 : vector<16x1xf32> to vector<16x32xf32>
      %152 = arith.subf %140, %151 : vector<16x32xf32>
      %153 = arith.mulf %152, %152 : vector<16x32xf32>
      %cst_56 = arith.constant dense<0.000000e+00> : vector<16xf32>
      %154 = vector.multi_reduction <add>, %153, %cst_56 [1] : vector<16x32xf32> to vector<16xf32>
      %155 = vector.shape_cast %154 : vector<16xf32> to vector<16x1xf32>
      %cst_57 = arith.constant 3.200000e+01 : f32
      %156 = vector.broadcast %cst_57 : f32 to vector<16x1xf32>
      %157 = arith.divf %155, %156 : vector<16x1xf32>
      %158 = vector.broadcast %150 : vector<16x1xf32> to vector<16x32xf32>
      %159 = arith.subf %140, %158 : vector<16x32xf32>
      %cst_58 = arith.constant 9.99999974E-6 : f32
      %160 = vector.broadcast %cst_58 : f32 to vector<16x1xf32>
      %161 = arith.addf %157, %160 : vector<16x1xf32>
      %162 = math.rsqrt %161 : vector<16x1xf32>
      %163 = vector.broadcast %162 : vector<16x1xf32> to vector<16x32xf32>
      %164 = arith.mulf %159, %163 : vector<16x32xf32>
      %165 = vector.broadcast %143 : vector<1x32xf32> to vector<16x32xf32>
      %166 = arith.mulf %164, %165 : vector<16x32xf32>
      %167 = vector.broadcast %146 : vector<1x32xf32> to vector<16x32xf32>
      %168 = arith.addf %166, %167 : vector<16x32xf32>
      %169 = arith.index_cast %arg21 : i32 to index
      %c0_59 = arith.constant 0 : index
      %c0_60 = arith.constant 0 : index
      %170 = vector.load %arg10[%169, %c0_59, %c0_60] : memref<2x32x64xbf16, #tpu.memory_space<vmem>>, vector<1x32x64xbf16>
      %171 = vector.shape_cast %170 : vector<1x32x64xbf16> to vector<32x64xbf16>
      %172 = arith.truncf %168 : vector<16x32xf32> to vector<16x32xbf16>
      %cst_61 = arith.constant dense<0.000000e+00> : vector<16x64xf32>
      %173 = tpu.matmul %172, %171, %cst_61 {dimension_numbers = #tpu.dot_dimension_numbers<[1], [0], [0], [1], [0, 0, 1, 1], [], []>} : vector<16x32xbf16>, vector<32x64xbf16>, vector<16x64xf32> -> vector<16x64xf32>
      %174 = arith.index_cast %arg21 : i32 to index
      %c0_62 = arith.constant 0 : index
      %c0_63 = arith.constant 0 : index
      %175 = vector.load %arg11[%174, %c0_62, %c0_63] : memref<2x1x64xf32, #tpu.memory_space<vmem>>, vector<1x1x64xf32>
      %176 = vector.shape_cast %175 : vector<1x1x64xf32> to vector<1x64xf32>
      %177 = vector.broadcast %176 : vector<1x64xf32> to vector<16x64xf32>
      %178 = arith.addf %173, %177 : vector<16x64xf32>
      %cst_64 = arith.constant 0.000000e+00 : f32
      %179 = vector.broadcast %cst_64 : f32 to vector<16x64xf32>
      %180 = arith.maximumf %178, %179 : vector<16x64xf32>
      %181 = arith.index_cast %arg21 : i32 to index
      %c0_65 = arith.constant 0 : index
      %c0_66 = arith.constant 0 : index
      %182 = vector.load %arg12[%181, %c0_65, %c0_66] : memref<2x64x32xbf16, #tpu.memory_space<vmem>>, vector<1x64x32xbf16>
      %183 = vector.shape_cast %182 : vector<1x64x32xbf16> to vector<64x32xbf16>
      %184 = arith.truncf %180 : vector<16x64xf32> to vector<16x64xbf16>
      %cst_67 = arith.constant dense<0.000000e+00> : vector<16x32xf32>
      %185 = tpu.matmul %184, %183, %cst_67 {dimension_numbers = #tpu.dot_dimension_numbers<[1], [0], [0], [1], [0, 0, 1, 1], [], []>} : vector<16x64xbf16>, vector<64x32xbf16>, vector<16x32xf32> -> vector<16x32xf32>
      %186 = arith.index_cast %arg21 : i32 to index
      %c0_68 = arith.constant 0 : index
      %c0_69 = arith.constant 0 : index
      %187 = vector.load %arg13[%186, %c0_68, %c0_69] : memref<2x1x32xf32, #tpu.memory_space<vmem>>, vector<1x1x32xf32>
      %188 = vector.shape_cast %187 : vector<1x1x32xf32> to vector<1x32xf32>
      %189 = vector.broadcast %188 : vector<1x32xf32> to vector<16x32xf32>
      %190 = arith.addf %185, %189 : vector<16x32xf32>
      %191 = arith.addf %168, %190 : vector<16x32xf32>
      %192 = arith.index_cast %arg21 : i32 to index
      %c0_70 = arith.constant 0 : index
      %c0_71 = arith.constant 0 : index
      %193 = vector.load %arg14[%192, %c0_70, %c0_71] : memref<2x1x32xf32, #tpu.memory_space<vmem>>, vector<1x1x32xf32>
      %194 = vector.shape_cast %193 : vector<1x1x32xf32> to vector<1x32xf32>
      %195 = arith.index_cast %arg21 : i32 to index
      %c0_72 = arith.constant 0 : index
      %c0_73 = arith.constant 0 : index
      %196 = vector.load %arg15[%195, %c0_72, %c0_73] : memref<2x1x32xf32, #tpu.memory_space<vmem>>, vector<1x1x32xf32>
      %197 = vector.shape_cast %196 : vector<1x1x32xf32> to vector<1x32xf32>
      %cst_74 = arith.constant dense<0.000000e+00> : vector<16xf32>
      %198 = vector.multi_reduction <add>, %191, %cst_74 [1] : vector<16x32xf32> to vector<16xf32>
      %199 = vector.shape_cast %198 : vector<16xf32> to vector<16x1xf32>
      %cst_75 = arith.constant 3.200000e+01 : f32
      %200 = vector.broadcast %cst_75 : f32 to vector<16x1xf32>
      %201 = arith.divf %199, %200 : vector<16x1xf32>
      %202 = vector.broadcast %201 : vector<16x1xf32> to vector<16x32xf32>
      %203 = arith.subf %191, %202 : vector<16x32xf32>
      %204 = arith.mulf %203, %203 : vector<16x32xf32>
      %cst_76 = arith.constant dense<0.000000e+00> : vector<16xf32>
      %205 = vector.multi_reduction <add>, %204, %cst_76 [1] : vector<16x32xf32> to vector<16xf32>
      %206 = vector.shape_cast %205 : vector<16xf32> to vector<16x1xf32>
      %cst_77 = arith.constant 3.200000e+01 : f32
      %207 = vector.broadcast %cst_77 : f32 to vector<16x1xf32>
      %208 = arith.divf %206, %207 : vector<16x1xf32>
      %209 = vector.broadcast %201 : vector<16x1xf32> to vector<16x32xf32>
      %210 = arith.subf %191, %209 : vector<16x32xf32>
      %cst_78 = arith.constant 9.99999974E-6 : f32
      %211 = vector.broadcast %cst_78 : f32 to vector<16x1xf32>
      %212 = arith.addf %208, %211 : vector<16x1xf32>
      %213 = math.rsqrt %212 : vector<16x1xf32>
      %214 = vector.broadcast %213 : vector<16x1xf32> to vector<16x32xf32>
      %215 = arith.mulf %210, %214 : vector<16x32xf32>
      %216 = vector.broadcast %194 : vector<1x32xf32> to vector<16x32xf32>
      %217 = arith.mulf %215, %216 : vector<16x32xf32>
      %218 = vector.broadcast %197 : vector<1x32xf32> to vector<16x32xf32>
      %219 = arith.addf %217, %218 : vector<16x32xf32>
      scf.yield %219 : vector<16x32xf32>
    }
    %c2_i32_6 = arith.constant 2 : i32
    %c0_7 = arith.constant 0 : index
    %c0_8 = arith.constant 0 : index
    %9 = vector.load %arg16[%c0_7, %c0_8] : memref<32x32xbf16, #tpu.memory_space<vmem>>, vector<32x32xbf16>
    %10 = arith.truncf %8 : vector<16x32xf32> to vector<16x32xbf16>
    %cst_9 = arith.constant dense<0.000000e+00> : vector<16x32xf32>
    %11 = tpu.matmul %10, %9, %cst_9 {dimension_numbers = #tpu.dot_dimension_numbers<[1], [0], [0], [1], [0, 0, 1, 1], [], []>} : vector<16x32xbf16>, vector<32x32xbf16>, vector<16x32xf32> -> vector<16x32xf32>
    %c0_10 = arith.constant 0 : index
    %c0_11 = arith.constant 0 : index
    %12 = vector.load %arg17[%c0_10, %c0_11] : memref<1x32xf32, #tpu.memory_space<vmem>>, vector<1x32xf32>
    %13 = vector.broadcast %12 : vector<1x32xf32> to vector<16x32xf32>
    %14 = arith.addf %11, %13 : vector<16x32xf32>
    %15 = math.tanh %14 : vector<16x32xf32>
    %c0_12 = arith.constant 0 : index
    %c0_13 = arith.constant 0 : index
    %16 = vector.load %arg18[%c0_12, %c0_13] : memref<32x1xbf16, #tpu.memory_space<vmem>>, vector<32x1xbf16>
    %17 = arith.truncf %15 : vector<16x32xf32> to vector<16x32xbf16>
    %cst_14 = arith.constant dense<0.000000e+00> : vector<16x1xf32>
    %18 = tpu.matmul %17, %16, %cst_14 {dimension_numbers = #tpu.dot_dimension_numbers<[1], [0], [0], [1], [0, 0, 1, 1], [], []>} : vector<16x32xbf16>, vector<32x1xbf16>, vector<16x1xf32> -> vector<16x1xf32>
    %c0_15 = arith.constant 0 : index
    %c0_16 = arith.constant 0 : index
    %19 = vector.load %arg19[%c0_15, %c0_16] : memref<1x1xf32, #tpu.memory_space<vmem>>, vector<1x1xf32>
    %20 = vector.broadcast %19 : vector<1x1xf32> to vector<16x1xf32>
    %21 = arith.addf %18, %20 : vector<16x1xf32>
    %22 = vector.shape_cast %21 : vector<16x1xf32> to vector<2x8x1xf32>
    %cst_17 = arith.constant dense<0xFF800000> : vector<2x1xf32>
    %23 = vector.multi_reduction <maximumf>, %22, %cst_17 [1] : vector<2x8x1xf32> to vector<2x1xf32>
    %24 = vector.shape_cast %23 : vector<2x1xf32> to vector<2x1x1xf32>
    %25 = vector.broadcast %24 : vector<2x1x1xf32> to vector<2x8x1xf32>
    %26 = arith.subf %22, %25 : vector<2x8x1xf32>
    %27 = math.exp %26 : vector<2x8x1xf32>
    %cst_18 = arith.constant dense<0.000000e+00> : vector<2x1xf32>
    %28 = vector.multi_reduction <add>, %27, %cst_18 [1] : vector<2x8x1xf32> to vector<2x1xf32>
    %29 = vector.shape_cast %28 : vector<2x1xf32> to vector<2x1x1xf32>
    %cst_19 = arith.constant 1.000000e-15 : f32
    %30 = vector.broadcast %cst_19 : f32 to vector<2x1x1xf32>
    %31 = arith.addf %29, %30 : vector<2x1x1xf32>
    %32 = tpu.reciprocal %31 {approx = true} : vector<2x1x1xf32> -> vector<2x1x1xf32>
    %33 = vector.broadcast %32 : vector<2x1x1xf32> to vector<2x8x1xf32>
    %34 = arith.mulf %27, %33 : vector<2x8x1xf32>
    %35 = vector.shape_cast %8 : vector<16x32xf32> to vector<2x8x32xf32>
    %36 = vector.broadcast %34 : vector<2x8x1xf32> to vector<2x8x32xf32>
    %37 = arith.mulf %36, %35 : vector<2x8x32xf32>
    %cst_20 = arith.constant dense<0.000000e+00> : vector<2x32xf32>
    %38 = vector.multi_reduction <add>, %37, %cst_20 [1] : vector<2x8x32xf32> to vector<2x32xf32>
    %39 = vector.shape_cast %38 : vector<2x32xf32> to vector<2x1x32xf32>
    %c0_21 = arith.constant 0 : index
    %c0_22 = arith.constant 0 : index
    %c0_23 = arith.constant 0 : index
    %40 = vector.load %arg20[%c0_21, %c0_22, %c0_23] : memref<2x1x32xf32, #tpu.memory_space<vmem>>, vector<2x1x32xf32>
    tpu.vector_store %arg20[%c0_21, %c0_22, %c0_23], %39 {strides = array<i32>} : memref<2x1x32xf32, #tpu.memory_space<vmem>>, vector<2x1x32xf32>,
    return
  }
  func.func @transform_0(%arg0: i32) -> (i32, i32, i32) {
    %c0_i32 = arith.constant 0 : i32
    %c0_i32_0 = arith.constant 0 : i32
    %c0_i32_1 = arith.constant 0 : i32
    return %arg0, %c0_i32, %c0_i32_0 : i32, i32, i32
  }
  func.func @transform_1(%arg0: i32) -> (i32, i32) {
    %c0_i32 = arith.constant 0 : i32
    %c0_i32_0 = arith.constant 0 : i32
    %c0_i32_1 = arith.constant 0 : i32
    return %c0_i32, %c0_i32_0 : i32, i32
  }
  func.func @transform_2(%arg0: i32) -> (i32, i32) {
    %c0_i32 = arith.constant 0 : i32
    %c0_i32_0 = arith.constant 0 : i32
    %c0_i32_1 = arith.constant 0 : i32
    return %c0_i32, %c0_i32_0 : i32, i32
  }
  func.func @transform_3(%arg0: i32) -> (i32, i32, i32) {
    %c0_i32 = arith.constant 0 : i32
    %c0_i32_0 = arith.constant 0 : i32
    %c0_i32_1 = arith.constant 0 : i32
    %c0_i32_2 = arith.constant 0 : i32
    return %c0_i32, %c0_i32_0, %c0_i32_1 : i32, i32, i32
  }
  func.func @transform_4(%arg0: i32) -> (i32, i32, i32) {
    %c0_i32 = arith.constant 0 : i32
    %c0_i32_0 = arith.constant 0 : i32
    %c0_i32_1 = arith.constant 0 : i32
    %c0_i32_2 = arith.constant 0 : i32
    return %c0_i32, %c0_i32_0, %c0_i32_1 : i32, i32, i32
  }
  func.func @transform_5(%arg0: i32) -> (i32, i32, i32) {
    %c0_i32 = arith.constant 0 : i32
    %c0_i32_0 = arith.constant 0 : i32
    %c0_i32_1 = arith.constant 0 : i32
    %c0_i32_2 = arith.constant 0 : i32
    return %c0_i32, %c0_i32_0, %c0_i32_1 : i32, i32, i32
  }
  func.func @transform_6(%arg0: i32) -> (i32, i32, i32) {
    %c0_i32 = arith.constant 0 : i32
    %c0_i32_0 = arith.constant 0 : i32
    %c0_i32_1 = arith.constant 0 : i32
    %c0_i32_2 = arith.constant 0 : i32
    return %c0_i32, %c0_i32_0, %c0_i32_1 : i32, i32, i32
  }
  func.func @transform_7(%arg0: i32) -> (i32, i32, i32) {
    %c0_i32 = arith.constant 0 : i32
    %c0_i32_0 = arith.constant 0 : i32
    %c0_i32_1 = arith.constant 0 : i32
    %c0_i32_2 = arith.constant 0 : i32
    return %c0_i32, %c0_i32_0, %c0_i32_1 : i32, i32, i32
  }
  func.func @transform_8(%arg0: i32) -> (i32, i32, i32) {
    %c0_i32 = arith.constant 0 : i32
    %c0_i32_0 = arith.constant 0 : i32
    %c0_i32_1 = arith.constant 0 : i32
    %c0_i32_2 = arith.constant 0 : i32
    return %c0_i32, %c0_i32_0, %c0_i32_1 : i32, i32, i32
  }
  func.func @transform_9(%arg0: i32) -> (i32, i32, i32) {
    %c0_i32 = arith.constant 0 : i32
    %c0_i32_0 = arith.constant 0 : i32
    %c0_i32_1 = arith.constant 0 : i32
    %c0_i32_2 = arith.constant 0 : i32
    return %c0_i32, %c0_i32_0, %c0_i32_1 : i32, i32, i32
  }
  func.func @transform_10(%arg0: i32) -> (i32, i32, i32) {
    %c0_i32 = arith.constant 0 : i32
    %c0_i32_0 = arith.constant 0 : i32
    %c0_i32_1 = arith.constant 0 : i32
    %c0_i32_2 = arith.constant 0 : i32
    return %c0_i32, %c0_i32_0, %c0_i32_1 : i32, i32, i32
  }
  func.func @transform_11(%arg0: i32) -> (i32, i32, i32) {
    %c0_i32 = arith.constant 0 : i32
    %c0_i32_0 = arith.constant 0 : i32
    %c0_i32_1 = arith.constant 0 : i32
    %c0_i32_2 = arith.constant 0 : i32
    return %c0_i32, %c0_i32_0, %c0_i32_1 : i32, i32, i32
  }
  func.func @transform_12(%arg0: i32) -> (i32, i32, i32) {
    %c0_i32 = arith.constant 0 : i32
    %c0_i32_0 = arith.constant 0 : i32
    %c0_i32_1 = arith.constant 0 : i32
    %c0_i32_2 = arith.constant 0 : i32
    return %c0_i32, %c0_i32_0, %c0_i32_1 : i32, i32, i32
  }
  func.func @transform_13(%arg0: i32) -> (i32, i32, i32) {
    %c0_i32 = arith.constant 0 : i32
    %c0_i32_0 = arith.constant 0 : i32
    %c0_i32_1 = arith.constant 0 : i32
    %c0_i32_2 = arith.constant 0 : i32
    return %c0_i32, %c0_i32_0, %c0_i32_1 : i32, i32, i32
  }
  func.func @transform_14(%arg0: i32) -> (i32, i32, i32) {
    %c0_i32 = arith.constant 0 : i32
    %c0_i32_0 = arith.constant 0 : i32
    %c0_i32_1 = arith.constant 0 : i32
    %c0_i32_2 = arith.constant 0 : i32
    return %c0_i32, %c0_i32_0, %c0_i32_1 : i32, i32, i32
  }
  func.func @transform_15(%arg0: i32) -> (i32, i32) {
    %c0_i32 = arith.constant 0 : i32
    %c0_i32_0 = arith.constant 0 : i32
    %c0_i32_1 = arith.constant 0 : i32
    return %c0_i32, %c0_i32_0 : i32, i32
  }
  func.func @transform_16(%arg0: i32) -> (i32, i32) {
    %c0_i32 = arith.constant 0 : i32
    %c0_i32_0 = arith.constant 0 : i32
    %c0_i32_1 = arith.constant 0 : i32
    return %c0_i32, %c0_i32_0 : i32, i32
  }
  func.func @transform_17(%arg0: i32) -> (i32, i32) {
    %c0_i32 = arith.constant 0 : i32
    %c0_i32_0 = arith.constant 0 : i32
    %c0_i32_1 = arith.constant 0 : i32
    return %c0_i32, %c0_i32_0 : i32, i32
  }
  func.func @transform_18(%arg0: i32) -> (i32, i32) {
    %c0_i32 = arith.constant 0 : i32
    %c0_i32_0 = arith.constant 0 : i32
    %c0_i32_1 = arith.constant 0 : i32
    return %c0_i32, %c0_i32_0 : i32, i32
  }
  func.func @transform_19(%arg0: i32) -> (i32, i32, i32) {
    %c0_i32 = arith.constant 0 : i32
    %c0_i32_0 = arith.constant 0 : i32
    %c0_i32_1 = arith.constant 0 : i32
    return %arg0, %c0_i32, %c0_i32_0 : i32, i32, i32
  }
}

</mosaic_0001>

<bundles_post_ra>
// kernel: tpu_custom_call.1
= control target key start
LH: loop header
LB: loop body
LE: loop exit
PB: predicated region body
PF: predicated region fallthrough
CT: control target
= control target key end

     0   :  { %s3519_s0 = inlined_call_operand.hbm [shape: f32[2,8,16], index: 0, kind: input, shape index: {}]   ;;  %s3520_s1 = inlined_call_operand.hbm [shape: f32[16,32], index: 1, kind: input, shape index: {}]   ;;  %s3521_s2 = inlined_call_operand.hbm [shape: bf16[16,32], index: 2, kind: input, shape index: {}]   ;;  %s3522_s3 = inlined_call_operand.hbm [shape: bf16[2,32,96], index: 3, kind: input, shape index: {}]   ;;  %s3523_s4 = inlined_call_operand.hbm [shape: f32[2,1,96], index: 4, kind: input, shape index: {}]   ;;  %s3524_s5 = inlined_call_operand.hbm [shape: bf16[2,32,32], index: 5, kind: input, shape index: {}]   ;;  %s3525_s6 = inlined_call_operand.hbm [shape: f32[2,1,32], index: 6, kind: input, shape index: {}]   ;;  %s3526_s7 = inlined_call_operand.hbm [shape: f32[2,1,32], index: 7, kind: input, shape index: {}]   ;;  %s3527_s8 = inlined_call_operand.hbm [shape: f32[2,1,32], index: 8, kind: input, shape index: {}]   ;;  %s3528_s9 = inlined_call_operand.hbm [shape: bf16[2,32,64], index: 9, kind: input, shape index: {}]   ;;  %s3529_s10 = inlined_call_operand.hbm [shape: f32[2,1,64], index: 10, kind: input, shape index: {}]   ;;  %s3530_s11 = inlined_call_operand.hbm [shape: bf16[2,64,32], index: 11, kind: input, shape index: {}]   ;;  %s3531_s12 = inlined_call_operand.hbm [shape: f32[2,1,32], index: 12, kind: input, shape index: {}]   ;;  %s3532_s13 = inlined_call_operand.hbm [shape: f32[2,1,32], index: 13, kind: input, shape index: {}]   ;;  %s3533_s14 = inlined_call_operand.hbm [shape: f32[2,1,32], index: 14, kind: input, shape index: {}]   ;;  %s3534_s15 = inlined_call_operand.hbm [shape: bf16[32,32], index: 15, kind: input, shape index: {}]   ;;  %s3535_s16 = inlined_call_operand.hbm [shape: f32[1,32], index: 16, kind: input, shape index: {}]   ;;  %s3536_s17 = inlined_call_operand.hbm [shape: bf16[32,1], index: 17, kind: input, shape index: {}]   ;;  %s3537_s18 = inlined_call_operand.<no memory space> [shape: f32[1,1], index: 18, kind: input, shape index: {}]   ;;  %s3538_s19 = inlined_call_operand.hbm [shape: f32[2,1,32], index: 19, kind: output, shape index: {}]  }
   0x1   :  { %3545 = sst [smem:[#allocation44_spill]] %s3519_s0  ;;  %v24_v0 = vstv %s3537_s18 }
   0x2   :  { %3546 = sst [smem:[#allocation45_spill]] %s3520_s1  ;;  %25 = vst [vmem:[#allocation2] sm:$0x1] %v24_v0 }
   0x3   :  { %3547 = sst [smem:[#allocation46_spill]] %s3521_s2 }
   0x4   :  { %3548 = sst [smem:[#allocation47_spill]] %s3522_s3 }
   0x5   :  { %3549 = sst [smem:[#allocation48_spill]] %s3536_s17 }
   0x6   :  { %3550 = sst [smem:[#allocation49_spill]] %s3538_s19 }
   0x7   :  { %26 = vsyncpa [#allocation4], 0 }
   0x8   :  { %27 = vsyncpa [#allocation7], 0 }
   0x9   :  { %28 = vsyncpa [#allocation10], 0 }
   0xa   :  { %29 = vsyncpa [#allocation13], 0 }
   0xb   :  { %30 = vsyncpa [#allocation16], 0 }
   0xc   :  { %31 = vsyncpa [#allocation19], 0 }
   0xd   :  { %32 = vsyncpa [#allocation22], 0 }
   0xe   :  { %33 = vsyncpa [#allocation25], 0 }
   0xf   :  { %34 = vsyncpa [#allocation28], 0 }
  0x10   :  { %35 = vsyncpa [#allocation31], 0 }
  0x11   :  { %36 = vsyncpa [#allocation5], 0  ;;  %s2833_s20 = smov [#allocation6]   ;;  %s3551_s2 = sld [smem:[#allocation45_spill]] }
  0x12   :  { %s54_s21 = sshll.u32 %s2833_s20, 4  ;;  %s55_s21 = int_to_ptr.vmem [resolvable:$true] %s54_s21 }
  0x17   :  { %s2369_s23 = scalar_lea.hbm %s3551_s2, 256 }
  0x18   :  { %p2370_p0 = scmp.ne.s32.totalorder %s3551_s2, %s2369_s23  ;;  %p2373_p1 = scmp.lt.u32.totalorder %s2369_s23, %s3551_s2 }
  0x1a   :  { %p2375_p2 = pnand %p2373_p1, %p2370_p0 }
  0x1c   :  { %2378 = shalt.err (!%p2375_p2)
}
  0x1d   :  { %s2379_s26 = scalar_lea.vmem %s55_s21, 256  ;;  %p2384_p4 = scmp.lt.s32.totalorder %s55_s21, %s55_s21 }
  0x1e   :  { %p2380_p3 = scmp.ne.s32.totalorder %s55_s21, %s2379_s26  ;;  %p2385_p5 = scmp.lt.s32.totalorder %s2379_s26, %s2379_s26 }
  0x20   :  { %p2386_p6 = por %p2385_p5, %p2384_p4 }
  0x22   :  { %p2387_p7 = pnand %p2386_p6, %p2380_p3 }
  0x24   :  { %2390 = shalt.err (!%p2387_p7)
}
  0x25   :  { %s2834_s27 = smov 128   ;;  %s2835_s28 = smov 8  }
  0x26   :  { %60 = dma.hbm_to_vmem [thread:$0]  %s3551_s2, 256, %s55_s21, [#allocation7], %s2834_s27, %s2834_s27, %s2835_s28  }
  0x27   :  { %s2836_s30 = smov [#allocation9]   ;;  %s2837_s1 = smov [#allocation12]  }
  0x28   :  { %s78_s20 = sshll.u32 %s2836_s30, 4  ;;  %s102_s22 = sshll.u32 %s2837_s1, 4  ;;  %s79_s20 = int_to_ptr.vmem [resolvable:$true] %s78_s20  ;;  %s103_s22 = int_to_ptr.vmem [resolvable:$true] %s102_s22 }
  0x29   :  { %s3552_s24 = sld [smem:[#allocation47_spill]] }
  0x2f   :  { %s2391_s25 = scalar_lea.hbm %s3552_s24, 512 }
  0x30   :  { %p2392_p8 = scmp.ne.s32.totalorder %s3552_s24, %s2391_s25  ;;  %p2395_p9 = scmp.lt.u32.totalorder %s2391_s25, %s3552_s24 }
  0x32   :  { %p2397_p10 = pnand %p2395_p9, %p2392_p8 }
  0x34   :  { %2400 = shalt.err (!%p2397_p10)
}
  0x35   :  { %s2401_s21 = scalar_lea.vmem %s79_s20, 512  ;;  %p2406_p12 = scmp.lt.s32.totalorder %s79_s20, %s79_s20 }
  0x36   :  { %p2402_p11 = scmp.ne.s32.totalorder %s79_s20, %s2401_s21  ;;  %p2407_p13 = scmp.lt.s32.totalorder %s2401_s21, %s2401_s21 }
  0x38   :  { %p2408_p0 = por %p2407_p13, %p2406_p12 }
  0x3a   :  { %p2409_p1 = pnand %p2408_p0, %p2402_p11 }
  0x3c   :  { %2412 = shalt.err (!%p2409_p1)
}
  0x3d   :  { %s2838_s2 = smov 64   ;;  %s2839_s29 = smov 4  }
  0x3e   :  { %84 = dma.hbm_to_vmem [thread:$0]  %s3552_s24, 512, %s79_s20, [#allocation10], %s2838_s2, %s2838_s2, %s2839_s29  }
  0x3f   :  { %s2413_s1 = scalar_lea.hbm %s3524_s5, 512 }
  0x40   :  { %p2414_p2 = scmp.ne.s32.totalorder %s3524_s5, %s2413_s1  ;;  %p2417_p3 = scmp.lt.u32.totalorder %s2413_s1, %s3524_s5 }
  0x42   :  { %p2419_p4 = pnand %p2417_p3, %p2414_p2 }
  0x44   :  { %2422 = shalt.err (!%p2419_p4)
}
  0x45   :  { %s2423_s26 = scalar_lea.vmem %s103_s22, 512  ;;  %p2428_p6 = scmp.lt.s32.totalorder %s103_s22, %s103_s22 }
  0x46   :  { %p2424_p5 = scmp.ne.s32.totalorder %s103_s22, %s2423_s26  ;;  %p2429_p7 = scmp.lt.s32.totalorder %s2423_s26, %s2423_s26 }
  0x48   :  { %p2430_p8 = por %p2429_p7, %p2428_p6 }
  0x4a   :  { %p2431_p9 = pnand %p2430_p8, %p2424_p5 }
  0x4c   :  { %2434 = shalt.err (!%p2431_p9)
}
  0x4d   :  { %108 = dma.hbm_to_vmem [thread:$0]  %s3524_s5, 512, %s103_s22, [#allocation13], %s2838_s2, %s2838_s2, %s2839_s29  }
  0x4e   :  { %s2840_s21 = smov [#allocation15]   ;;  %s2841_s30 = smov [#allocation18]  }
  0x4f   :  { %s126_s0 = sshll.u32 %s2840_s21, 4  ;;  %s150_s17 = sshll.u32 %s2841_s30, 4  ;;  %s127_s0 = int_to_ptr.vmem [resolvable:$true] %s126_s0  ;;  %s151_s17 = int_to_ptr.vmem [resolvable:$true] %s150_s17 }
  0x50   :  { %s2435_s23 = scalar_lea.hbm %s3526_s7, 32 }
  0x51   :  { %p2436_p10 = scmp.ne.s32.totalorder %s3526_s7, %s2435_s23  ;;  %p2439_p11 = scmp.lt.u32.totalorder %s2435_s23, %s3526_s7 }
  0x53   :  { %p2441_p12 = pnand %p2439_p11, %p2436_p10 }
  0x55   :  { %2444 = shalt.err (!%p2441_p12)
}
  0x56   :  { %s2445_s5 = scalar_lea.vmem %s127_s0, 32  ;;  %p2450_p0 = scmp.lt.s32.totalorder %s127_s0, %s127_s0 }
  0x57   :  { %p2446_p13 = scmp.ne.s32.totalorder %s127_s0, %s2445_s5  ;;  %p2451_p1 = scmp.lt.s32.totalorder %s2445_s5, %s2445_s5 }
  0x59   :  { %p2452_p2 = por %p2451_p1, %p2450_p0 }
  0x5b   :  { %p2453_p3 = pnand %p2452_p2, %p2446_p13 }
  0x5d   :  { %2456 = shalt.err (!%p2453_p3)
}
  0x5e   :  { %s2842_s22 = smov 16   ;;  %s2843_s20 = smov 1  }
  0x5f   :  { %132 = dma.hbm_to_vmem [thread:$0]  %s3526_s7, 32, %s127_s0, [#allocation16], %s2842_s22, %s2842_s22, %s2843_s20  }
  0x60   :  { %s2457_s1 = scalar_lea.hbm %s3528_s9, 512 }
  0x61   :  { %p2458_p4 = scmp.ne.s32.totalorder %s3528_s9, %s2457_s1  ;;  %p2461_p5 = scmp.lt.u32.totalorder %s2457_s1, %s3528_s9 }
  0x63   :  { %p2463_p6 = pnand %p2461_p5, %p2458_p4 }
  0x65   :  { %2466 = shalt.err (!%p2463_p6)
}
  0x66   :  { %s2467_s26 = scalar_lea.vmem %s151_s17, 512  ;;  %p2472_p8 = scmp.lt.s32.totalorder %s151_s17, %s151_s17 }
  0x67   :  { %p2468_p7 = scmp.ne.s32.totalorder %s151_s17, %s2467_s26  ;;  %p2473_p9 = scmp.lt.s32.totalorder %s2467_s26, %s2467_s26 }
  0x69   :  { %p2474_p10 = por %p2473_p9, %p2472_p8 }
  0x6b   :  { %p2475_p11 = pnand %p2474_p10, %p2468_p7 }
  0x6d   :  { %2478 = shalt.err (!%p2475_p11)
}
  0x6e   :  { %156 = dma.hbm_to_vmem [thread:$0]  %s3528_s9, 512, %s151_s17, [#allocation19], %s2838_s2, %s2838_s2, %s2839_s29  }
  0x6f   :  { %s2844_s5 = smov [#allocation21]   ;;  %s2845_s21 = smov [#allocation24]  }
  0x70   :  { %s174_s24 = sshll.u32 %s2844_s5, 4  ;;  %s198_s30 = sshll.u32 %s2845_s21, 4  ;;  %s175_s24 = int_to_ptr.vmem [resolvable:$true] %s174_s24  ;;  %s199_s30 = int_to_ptr.vmem [resolvable:$true] %s198_s30 }
  0x71   :  { %s2479_s23 = scalar_lea.hbm %s3530_s11, 1024 }
  0x72   :  { %p2480_p12 = scmp.ne.s32.totalorder %s3530_s11, %s2479_s23  ;;  %p2483_p13 = scmp.lt.u32.totalorder %s2479_s23, %s3530_s11 }
  0x74   :  { %p2485_p0 = pnand %p2483_p13, %p2480_p12 }
  0x76   :  { %2488 = shalt.err (!%p2485_p0)
}
  0x77   :  { %s2489_s9 = scalar_lea.vmem %s175_s24, 1024  ;;  %p2494_p2 = scmp.lt.s32.totalorder %s175_s24, %s175_s24 }
  0x78   :  { %p2490_p1 = scmp.ne.s32.totalorder %s175_s24, %s2489_s9  ;;  %p2495_p3 = scmp.lt.s32.totalorder %s2489_s9, %s2489_s9 }
  0x7a   :  { %p2496_p4 = por %p2495_p3, %p2494_p2 }
  0x7c   :  { %p2497_p5 = pnand %p2496_p4, %p2490_p1 }
  0x7e   :  { %2500 = shalt.err (!%p2497_p5)
}
  0x7f   :  { %180 = dma.hbm_to_vmem [thread:$0]  %s3530_s11, 1024, %s175_s24, [#allocation22], %s2838_s2, %s2838_s2, %s2839_s29  }
  0x80   :  { %s2501_s21 = scalar_lea.hbm %s3532_s13, 32 }
  0x81   :  { %p2502_p6 = scmp.ne.s32.totalorder %s3532_s13, %s2501_s21  ;;  %p2505_p7 = scmp.lt.u32.totalorder %s2501_s21, %s3532_s13 }
  0x83   :  { %p2507_p8 = pnand %p2505_p7, %p2502_p6 }
  0x85   :  { %2510 = shalt.err (!%p2507_p8)
}
  0x86   :  { %s2511_s25 = scalar_lea.vmem %s199_s30, 32  ;;  %p2516_p10 = scmp.lt.s32.totalorder %s199_s30, %s199_s30 }
  0x87   :  { %p2512_p9 = scmp.ne.s32.totalorder %s199_s30, %s2511_s25  ;;  %p2517_p11 = scmp.lt.s32.totalorder %s2511_s25, %s2511_s25 }
  0x89   :  { %p2518_p12 = por %p2517_p11, %p2516_p10 }
  0x8b   :  { %p2519_p13 = pnand %p2518_p12, %p2512_p9 }
  0x8d   :  { %2522 = shalt.err (!%p2519_p13)
}
  0x8e   :  { %204 = dma.hbm_to_vmem [thread:$0]  %s3532_s13, 32, %s199_s30, [#allocation25], %s2842_s22, %s2842_s22, %s2843_s20  }
  0x8f   :  { %s2846_s3 = smov [#allocation27]   ;;  %s2847_s9 = smov [#allocation3]  }
  0x90   :  { %s222_s26 = sshll.u32 %s2846_s3, 4  ;;  %s42_s17 = sshll.u32 %s2847_s9, 4  ;;  %s223_s26 = int_to_ptr.vmem [resolvable:$true] %s222_s26  ;;  %s43_s17 = int_to_ptr.vmem [resolvable:$true] %s42_s17 }
  0x91   :  { %s2523_s5 = scalar_lea.hbm %s3534_s15, 256 }
  0x92   :  { %p2524_p0 = scmp.ne.s32.totalorder %s3534_s15, %s2523_s5  ;;  %p2527_p1 = scmp.lt.u32.totalorder %s2523_s5, %s3534_s15 }
  0x94   :  { %p2529_p2 = pnand %p2527_p1, %p2524_p0 }
  0x96   :  { %2532 = shalt.err (!%p2529_p2)
}
  0x97   :  { %s2533_s13 = scalar_lea.vmem %s223_s26, 256  ;;  %p2538_p4 = scmp.lt.s32.totalorder %s223_s26, %s223_s26 }
  0x98   :  { %p2534_p3 = scmp.ne.s32.totalorder %s223_s26, %s2533_s13  ;;  %p2539_p5 = scmp.lt.s32.totalorder %s2533_s13, %s2533_s13 }
  0x9a   :  { %p2540_p6 = por %p2539_p5, %p2538_p4 }
  0x9c   :  { %p2541_p7 = pnand %p2540_p6, %p2534_p3 }
  0x9e   :  { %2544 = shalt.err (!%p2541_p7)
}
  0x9f   :  { %228 = dma.hbm_to_vmem [thread:$0]  %s3534_s15, 256, %s223_s26, [#allocation28], %s2838_s2, %s2838_s2, %s2839_s29  }
  0xa0   :  { %s3553_s24 = sld [smem:[#allocation44_spill]] }
  0xa6   :  { %s2545_s3 = scalar_lea.hbm %s3553_s24, 256 }
  0xa7   :  { %p2546_p8 = scmp.ne.s32.totalorder %s3553_s24, %s2545_s3  ;;  %p2549_p9 = scmp.lt.u32.totalorder %s2545_s3, %s3553_s24 }
  0xa9   :  { %p2551_p10 = pnand %p2549_p9, %p2546_p8 }
  0xab   :  { %2554 = shalt.err (!%p2551_p10)
}
  0xac   :  { %s2555_s21 = scalar_lea.vmem %s43_s17, 256  ;;  %p2560_p12 = scmp.lt.s32.totalorder %s43_s17, %s43_s17 }
  0xad   :  { %p2556_p11 = scmp.ne.s32.totalorder %s43_s17, %s2555_s21  ;;  %p2561_p13 = scmp.lt.s32.totalorder %s2555_s21, %s2555_s21 }
  0xaf   :  { %p2562_p0 = por %p2561_p13, %p2560_p12 }
  0xb1   :  { %p2563_p1 = pnand %p2562_p0, %p2556_p11 }
  0xb3   :  { %2566 = shalt.err (!%p2563_p1)
}
  0xb4   :  { %48 = dma.hbm_to_vmem [thread:$0]  %s3553_s24, 256, %s43_s17, [#allocation4], %s2834_s27, %s2834_s27, %s2835_s28  }
  0xb5   :  { %s2848_s19 = smov [#allocation8]   ;;  %s2849_s23 = smov [#allocation11]  }
  0xb6   :  { %s66_s1 = sshll.u32 %s2848_s19, 4  ;;  %s90_s13 = sshll.u32 %s2849_s23, 4  ;;  %s67_s1 = int_to_ptr.vmem [resolvable:$true] %s66_s1  ;;  %s91_s13 = int_to_ptr.vmem [resolvable:$true] %s90_s13 }
  0xb7   :  { %s3554_s25 = sld [smem:[#allocation46_spill]] }
  0xbd   :  { %s2567_s11 = scalar_lea.hbm %s3554_s25, 128 }
  0xbe   :  { %p2568_p2 = scmp.ne.s32.totalorder %s3554_s25, %s2567_s11  ;;  %p2571_p3 = scmp.lt.u32.totalorder %s2567_s11, %s3554_s25 }
  0xc0   :  { %p2573_p4 = pnand %p2571_p3, %p2568_p2 }
  0xc2   :  { %2576 = shalt.err (!%p2573_p4)
}
  0xc3   :  { %s2577_s27 = scalar_lea.vmem %s67_s1, 128  ;;  %p2582_p6 = scmp.lt.s32.totalorder %s67_s1, %s67_s1 }
  0xc4   :  { %p2578_p5 = scmp.ne.s32.totalorder %s67_s1, %s2577_s27  ;;  %p2583_p7 = scmp.lt.s32.totalorder %s2577_s27, %s2577_s27 }
  0xc6   :  { %p2584_p8 = por %p2583_p7, %p2582_p6 }
  0xc8   :  { %p2585_p9 = pnand %p2584_p8, %p2578_p5 }
  0xca   :  { %2588 = shalt.err (!%p2585_p9)
}
  0xcb   :  { %72 = dma.hbm_to_vmem [thread:$0]  %s3554_s25, 128, %s67_s1, [#allocation7], %s2838_s2, %s2838_s2, %s2839_s29  }
  0xcc   :  { %s2589_s21 = scalar_lea.hbm %s3523_s4, 32 }
  0xcd   :  { %p2590_p10 = scmp.ne.s32.totalorder %s3523_s4, %s2589_s21  ;;  %p2593_p11 = scmp.lt.u32.totalorder %s2589_s21, %s3523_s4 }
  0xcf   :  { %p2595_p12 = pnand %p2593_p11, %p2590_p10 }
  0xd1   :  { %2598 = shalt.err (!%p2595_p12)
}
  0xd2   :  { %s2599_s30 = scalar_lea.vmem %s91_s13, 32  ;;  %p2604_p0 = scmp.lt.s32.totalorder %s91_s13, %s91_s13 }
  0xd3   :  { %p2600_p13 = scmp.ne.s32.totalorder %s91_s13, %s2599_s30  ;;  %p2605_p1 = scmp.lt.s32.totalorder %s2599_s30, %s2599_s30 }
  0xd5   :  { %p2606_p2 = por %p2605_p1, %p2604_p0 }
  0xd7   :  { %p2607_p3 = pnand %p2606_p2, %p2600_p13 }
  0xd9   :  { %2610 = shalt.err (!%p2607_p3)
}
  0xda   :  { %96 = dma.hbm_to_vmem [thread:$0]  %s3523_s4, 32, %s91_s13, [#allocation10], %s2842_s22, %s2842_s22, %s2843_s20  }
  0xdb   :  { %s2850_s25 = smov [#allocation14]   ;;  %s2851_s3 = smov [#allocation17]  }
  0xdc   :  { %s114_s11 = sshll.u32 %s2850_s25, 4  ;;  %s138_s9 = sshll.u32 %s2851_s3, 4  ;;  %s115_s11 = int_to_ptr.vmem [resolvable:$true] %s114_s11  ;;  %s139_s9 = int_to_ptr.vmem [resolvable:$true] %s138_s9 }
  0xdd   :  { %s2611_s27 = scalar_lea.hbm %s3525_s6, 32 }
  0xde   :  { %p2612_p4 = scmp.ne.s32.totalorder %s3525_s6, %s2611_s27  ;;  %p2615_p5 = scmp.lt.u32.totalorder %s2611_s27, %s3525_s6 }
  0xe0   :  { %p2617_p6 = pnand %p2615_p5, %p2612_p4 }
  0xe2   :  { %2620 = shalt.err (!%p2617_p6)
}
  0xe3   :  { %s2621_s4 = scalar_lea.vmem %s115_s11, 32  ;;  %p2626_p8 = scmp.lt.s32.totalorder %s115_s11, %s115_s11 }
  0xe4   :  { %p2622_p7 = scmp.ne.s32.totalorder %s115_s11, %s2621_s4  ;;  %p2627_p9 = scmp.lt.s32.totalorder %s2621_s4, %s2621_s4 }
  0xe6   :  { %p2628_p10 = por %p2627_p9, %p2626_p8 }
  0xe8   :  { %p2629_p11 = pnand %p2628_p10, %p2622_p7 }
  0xea   :  { %2632 = shalt.err (!%p2629_p11)
}
  0xeb   :  { %120 = dma.hbm_to_vmem [thread:$0]  %s3525_s6, 32, %s115_s11, [#allocation13], %s2842_s22, %s2842_s22, %s2843_s20  }
  0xec   :  { %s2633_s19 = scalar_lea.hbm %s3527_s8, 32 }
  0xed   :  { %p2634_p12 = scmp.ne.s32.totalorder %s3527_s8, %s2633_s19  ;;  %p2637_p13 = scmp.lt.u32.totalorder %s2633_s19, %s3527_s8 }
  0xef   :  { %p2639_p0 = pnand %p2637_p13, %p2634_p12 }
  0xf1   :  { %2642 = shalt.err (!%p2639_p0)
}
  0xf2   :  { %s2643_s25 = scalar_lea.vmem %s139_s9, 32  ;;  %p2648_p2 = scmp.lt.s32.totalorder %s139_s9, %s139_s9 }
  0xf3   :  { %p2644_p1 = scmp.ne.s32.totalorder %s139_s9, %s2643_s25  ;;  %p2649_p3 = scmp.lt.s32.totalorder %s2643_s25, %s2643_s25 }
  0xf5   :  { %p2650_p4 = por %p2649_p3, %p2648_p2 }
  0xf7   :  { %p2651_p5 = pnand %p2650_p4, %p2644_p1 }
  0xf9   :  { %2654 = shalt.err (!%p2651_p5)
}
  0xfa   :  { %144 = dma.hbm_to_vmem [thread:$0]  %s3527_s8, 32, %s139_s9, [#allocation16], %s2842_s22, %s2842_s22, %s2843_s20  }
  0xfb   :  { %s2852_s3 = smov [#allocation20]   ;;  %s2853_s0 = smov [#allocation23]  }
  0xfc   :  { %s162_s7 = sshll.u32 %s2852_s3, 4  ;;  %s186_s27 = sshll.u32 %s2853_s0, 4  ;;  %s163_s7 = int_to_ptr.vmem [resolvable:$true] %s162_s7  ;;  %s187_s27 = int_to_ptr.vmem [resolvable:$true] %s186_s27 }
  0xfd   :  { %s2655_s24 = scalar_lea.hbm %s3529_s10, 32 }
  0xfe   :  { %p2656_p6 = scmp.ne.s32.totalorder %s3529_s10, %s2655_s24  ;;  %p2659_p7 = scmp.lt.u32.totalorder %s2655_s24, %s3529_s10 }
 0x100   :  { %p2661_p8 = pnand %p2659_p7, %p2656_p6 }
 0x102   :  { %2664 = shalt.err (!%p2661_p8)
}
 0x103   :  { %s2665_s8 = scalar_lea.vmem %s163_s7, 32  ;;  %p2670_p10 = scmp.lt.s32.totalorder %s163_s7, %s163_s7 }
 0x104   :  { %p2666_p9 = scmp.ne.s32.totalorder %s163_s7, %s2665_s8  ;;  %p2671_p11 = scmp.lt.s32.totalorder %s2665_s8, %s2665_s8 }
 0x106   :  { %p2672_p12 = por %p2671_p11, %p2670_p10 }
 0x108   :  { %p2673_p13 = pnand %p2672_p12, %p2666_p9 }
 0x10a   :  { %2676 = shalt.err (!%p2673_p13)
}
 0x10b   :  { %168 = dma.hbm_to_vmem [thread:$0]  %s3529_s10, 32, %s163_s7, [#allocation19], %s2842_s22, %s2842_s22, %s2843_s20  }
 0x10c   :  { %s2677_s23 = scalar_lea.hbm %s3531_s12, 32 }
 0x10d   :  { %p2678_p0 = scmp.ne.s32.totalorder %s3531_s12, %s2677_s23  ;;  %p2681_p1 = scmp.lt.u32.totalorder %s2677_s23, %s3531_s12 }
 0x10f   :  { %p2683_p2 = pnand %p2681_p1, %p2678_p0 }
 0x111   :  { %2686 = shalt.err (!%p2683_p2)
}
 0x112   :  { %s2687_s6 = scalar_lea.vmem %s187_s27, 32  ;;  %p2692_p4 = scmp.lt.s32.totalorder %s187_s27, %s187_s27 }
 0x113   :  { %p2688_p3 = scmp.ne.s32.totalorder %s187_s27, %s2687_s6  ;;  %p2693_p5 = scmp.lt.s32.totalorder %s2687_s6, %s2687_s6 }
 0x115   :  { %p2694_p6 = por %p2693_p5, %p2692_p4 }
 0x117   :  { %p2695_p7 = pnand %p2694_p6, %p2688_p3 }
 0x119   :  { %2698 = shalt.err (!%p2695_p7)
}
 0x11a   :  { %192 = dma.hbm_to_vmem [thread:$0]  %s3531_s12, 32, %s187_s27, [#allocation22], %s2842_s22, %s2842_s22, %s2843_s20  }
 0x11b   :  { %s2854_s3 = smov [#allocation26]   ;;  %s2855_s0 = smov [#allocation29]  }
 0x11c   :  { %s210_s7 = sshll.u32 %s2854_s3, 4  ;;  %s235_s28 = sshll.u32 %s2855_s0, 4  ;;  %s211_s7 = int_to_ptr.vmem [resolvable:$true] %s210_s7  ;;  %s236_s28 = int_to_ptr.vmem [resolvable:$true] %s235_s28 }
 0x11d   :  { %s2699_s5 = scalar_lea.hbm %s3533_s14, 32 }
 0x11e   :  { %p2700_p8 = scmp.ne.s32.totalorder %s3533_s14, %s2699_s5  ;;  %p2703_p9 = scmp.lt.u32.totalorder %s2699_s5, %s3533_s14 }
 0x120   :  { %p2705_p10 = pnand %p2703_p9, %p2700_p8 }
 0x122   :  { %2708 = shalt.err (!%p2705_p10)
}
 0x123   :  { %s2709_s12 = scalar_lea.vmem %s211_s7, 32  ;;  %p2714_p12 = scmp.lt.s32.totalorder %s211_s7, %s211_s7 }
 0x124   :  { %p2710_p11 = scmp.ne.s32.totalorder %s211_s7, %s2709_s12  ;;  %p2715_p13 = scmp.lt.s32.totalorder %s2709_s12, %s2709_s12 }
 0x126   :  { %p2716_p0 = por %p2715_p13, %p2714_p12 }
 0x128   :  { %p2717_p1 = pnand %p2716_p0, %p2710_p11 }
 0x12a   :  { %2720 = shalt.err (!%p2717_p1)
}
 0x12b   :  { %216 = dma.hbm_to_vmem [thread:$0]  %s3533_s14, 32, %s211_s7, [#allocation25], %s2842_s22, %s2842_s22, %s2843_s20  }
 0x12c   :  { %s2721_s19 = scalar_lea.hbm %s3535_s16, 16 }
 0x12d   :  { %p2722_p2 = scmp.ne.s32.totalorder %s3535_s16, %s2721_s19  ;;  %p2725_p3 = scmp.lt.u32.totalorder %s2721_s19, %s3535_s16 }
 0x12f   :  { %p2727_p4 = pnand %p2725_p3, %p2722_p2 }
 0x131   :  { %2730 = shalt.err (!%p2727_p4)
}
 0x132   :  { %s2731_s25 = scalar_lea.vmem %s236_s28, 16  ;;  %s2735_s6 = scalar_lea.vmem %s236_s28, 32 }
 0x133   :  { %p2732_p5 = scmp.ne.s32.totalorder %s236_s28, %s2731_s25  ;;  %p2736_p6 = scmp.lt.s32.totalorder %s236_s28, %s236_s28 }
 0x134   :  { %p2737_p7 = scmp.lt.s32.totalorder %s2735_s6, %s2731_s25 }
 0x136   :  { %p2738_p8 = por %p2737_p7, %p2736_p6 }
 0x138   :  { %p2739_p9 = pnand %p2738_p8, %p2732_p5 }
 0x13a   :  { %2742 = shalt.err (!%p2739_p9)
}
 0x13b   :  { %238 = dma.hbm_to_vmem [thread:$0]  %s3535_s16, 16, %s236_s28, [#allocation28]  }
 0x13c   :  { %s2856_s11 = smov [#allocation30]   ;;  %s3555_s17 = sld [smem:[#allocation48_spill]] }
 0x13d   :  { %s244_s3 = sshll.u32 %s2856_s11, 4  ;;  %s245_s3 = int_to_ptr.vmem [resolvable:$true] %s244_s3 }
 0x142   :  { %s2743_s24 = scalar_lea.hbm %s3555_s17, 256 }
 0x143   :  { %p2744_p10 = scmp.ne.s32.totalorder %s3555_s17, %s2743_s24  ;;  %p2747_p11 = scmp.lt.u32.totalorder %s2743_s24, %s3555_s17 }
 0x145   :  { %p2749_p12 = pnand %p2747_p11, %p2744_p10 }
 0x147   :  { %2752 = shalt.err (!%p2749_p12)
}
 0x148   :  { %s2753_s8 = scalar_lea.vmem %s245_s3, 256  ;;  %p2758_p0 = scmp.lt.s32.totalorder %s245_s3, %s245_s3 }
 0x149   :  { %p2754_p13 = scmp.ne.s32.totalorder %s245_s3, %s2753_s8  ;;  %p2759_p1 = scmp.lt.s32.totalorder %s2753_s8, %s2753_s8 }
 0x14b   :  { %p2760_p2 = por %p2759_p1, %p2758_p0 }
 0x14d   :  { %p2761_p3 = pnand %p2760_p2, %p2754_p13 }
 0x14f   :  { %2764 = shalt.err (!%p2761_p3)
}
 0x150   :  { %250 = dma.hbm_to_vmem [thread:$0]  %s3555_s17, 256, %s245_s3, [#allocation31], %s2838_s2, %s2838_s2, %s2839_s29  }
 0x151   :  { %2799 = dma.done.wait [#allocation4], 256  }
 0x152   :  { %2800 = vsyncadd [#allocation4], 4294967040 }
 0x153   :  { %2801 = dma.done.wait [#allocation7], 384  }
 0x154   :  { %2802 = vsyncadd [#allocation7], 4294966912 }
 0x155   :  { %2803 = dma.done.wait [#allocation10], 544  }
 0x156   :  { %2804 = vsyncadd [#allocation10], 4294966752 }
 0x157   :  { %2805 = dma.done.wait [#allocation13], 544  }
 0x158   :  { %2806 = vsyncadd [#allocation13], 4294966752 }
 0x159   :  { %2807 = dma.done.wait [#allocation16], 64  }
 0x15a   :  { %2808 = vsyncadd [#allocation16], 4294967232 }
 0x15b   :  { %2809 = dma.done.wait [#allocation19], 544  }
 0x15c   :  { %2810 = vsyncadd [#allocation19], 4294966752 }
 0x15d   :  { %2811 = dma.done.wait [#allocation22], 1056  }
 0x15e   :  { %2812 = vsyncadd [#allocation22], 4294966240 }
 0x15f   :  { %2813 = dma.done.wait [#allocation25], 64  }
 0x160   :  { %2814 = vsyncadd [#allocation25], 4294967232 }
 0x161   :  { %2815 = dma.done.wait [#allocation28], 272  }
 0x162   :  { %2816 = vsyncadd [#allocation28], 4294967024 }
 0x163   :  { %2817 = dma.done.wait [#allocation31], 256  }
 0x164   :  { %2818 = vsyncadd [#allocation31], 4294967040  ;;  %v2857_v1 = vmov 0.0   ;;  %vm2858_vm0 = vmmov 0   ;;  %v2286_v2 = vld [vmem:[#allocation8] sm:$0xff]   ;;  %v309_v4 = vld [vmem:[#allocation3 + $0x8] sm:$0xff] }
 0x165   :  { %2064 = vmatprep.subr.bf16.mxu0 %v2857_v1  ;;  %2066 = vmatprep.mubr.msk.bf16.mxu0 %vm2858_vm0, %v2857_v1  ;;  %v308_v3 = vld [vmem:[#allocation3] sm:$0xff]  ;;  %vm321_vm1 = vcmask 130048   ;;  %v313_v6 = vld [vmem:[#allocation6] sm:$0xff]  ;;  %v314_v8 = vld [vmem:[#allocation6 + $0x8] sm:$0xff]  ;;  %s3255_s2 = smov 0  }
 0x166   :  { %2065 = vmatpush3.bf16.msra.mxu0 %v2286_v2  ;;  %v312_v5 = vpack.c.bf16 %v309_v4, %v308_v3 }
 0x169   :  { %2067 = vmatmul.mubr.msk.bf16.vlgmr.msra.gmra.mrb[0].mxu0 %vm321_vm1, %v312_v5 }
 0x23c   :  { %v359_v7 = vpop.f32.mrb[0].mxu0 }
 0x23d   :  { %v360_v9 = vadd.f32 %v359_v7, %v313_v6   ;;  %v2068_v10 = vpop.f32.mrb[1].mxu0 }
 0x23e   :  { %v362_v11 = vpop.f32.mrb[2].mxu0 }
 0x23f   :  { %v363_v12 = vadd.f32 %v362_v11, %v314_v8   ;;  %v2069_v13 = vpop.f32.mrb[3].mxu0 }
 0x240 LB: > { %v2859_v14 = vmov 0.0   ;;  %vm2860_vm2 = vmmov 0   ;;  %s3270_s29 = sshll.u32 %s2831_s2, 4  ;;  %v381_v17 = vpack.c.bf16 %v2823_v12, %v2827_v9  ;;  %vm402_vm3 = vcmask 261120   ;;  %s382_s15 = scalar_lea.vmem [#allocation11], %s2831_s2  ;;  %s2831_s2 = sphi %s3255_s2, %s371_s2   ;;  %v2827_v9 = vphi %v360_v9, %v3559_v9   ;;  %v2823_v12 = vphi %v363_v12, %v3558_v12  }
 0x241   : > { %2070 = vmatprep.subr.bf16.mxu0 %v2859_v14  ;;  %2074 = vmatprep.mubr.msk.bf16.mxu0 %vm2860_vm2, %v2859_v14  ;;  %s376_s12 = scalar_lea.vmem [#allocation9], %s3270_s29  ;;  %s1361_s27 = scalar_lea.vmem [#allocation12], %s3270_s29  ;;  %v1956_v18 = vld [vmem:[%s382_s15] ss:$0 sm:$0xff]  ;;  %vm452_vm4 = vcmask 64512   ;;  %vm577_vm5 = vcmask 1043456  }
 0x242   : > { %2078 = vmatprep.subr.bf16.mxu1 %v2859_v14  ;;  %2080 = vmatprep.mubr.msk.bf16.mxu1 %vm2860_vm2, %v2859_v14  ;;  %v2302_v15 = vld [vmem:[%s376_s12] sm:$0xff]   ;;  %v2303_v16 = vld [vmem:[%s376_s12 + $0x8] sm:$0xff]   ;;  %s1481_s9 = scalar_lea.vmem [#allocation18], %s3270_s29  ;;  %s2861_s26 = smov 96   ;;  %vm1357_vm6 = vcmask 195584   ;;  %vm1597_vm7 = vcmask 523264  }
 0x243   : > { %2071 = vmatpush3.bf16.msra.mxu0 %v2302_v15  ;;  %s2862_s19 = smov 64   ;;  %s2863_s23 = smov 88  }
 0x244   : > { %2072 = vmatprep.subr.bf16.mxu0 %v2859_v14  ;;  %s2864_s30 = smov 120   ;;  %s2865_s1 = smov 56  }
 0x245   : > { %s2866_s18 = smov 80   ;;  %s2867_s25 = smov 112  }
 0x246   : > { %s2868_s6 = smov 48   ;;  %s2869_s14 = smov 72  }
 0x247   : > { %2073 = vmatpush3.bf16.msra.mxu0 %v2303_v16  ;;  %s2870_s10 = smov 104   ;;  %s2871_s11 = smov 40  }
 0x248   : > { %2084 = vmatprep.subr.bf16.mxu0 %v2859_v14  ;;  %s2872_s3 = smov 8   ;;  %s2873_s7 = smov 16  }
 0x249   : > { %s2874_s0 = smov 24   ;;  %s1367_s17 = scalar_lea.vmem [#allocation14], %s2831_s2 }
 0x24a   : > { %2075 = vmatmul.mubr.msk.bf16.vlgmr.msra.gmra.mrb[0].mxu0 %vm402_vm3, %v381_v17  ;;  %s2009_s24 = sshll.u32 %s2831_s2, 5  ;;  %s1433_s4 = scalar_lea.vmem [#allocation15], %s2831_s2 }
 0x24b   : > { %2086 = vmatprep.mubr.msk.bf16.mxu0 %vm2860_vm2, %v2859_v14  ;;  %s3451_s5 = scalar_lea.vmem [#allocation21], %s2009_s24  ;;  %s1435_s13 = scalar_lea.vmem [#allocation17], %s2831_s2 }
 0x24c   : > { %s1487_s21 = scalar_lea.vmem [#allocation20], %s2831_s2  ;;  %s1565_s8 = scalar_lea.vmem [#allocation23], %s2831_s2 }
 0x24d   : > { %s1644_s16 = scalar_lea.vmem [#allocation24], %s2831_s2  ;;  %s1646_s28 = scalar_lea.vmem [#allocation26], %s2831_s2 }
 0x24e   : > { %s371_s2 = sadd.s32 1, %s2831_s2  }
 0x24f   : > { %p368_p4 = scmp.ge.s32.totalorder %s371_s2, 2  }
 0x250   :  { %vm1829_vm8 = vcmask (%p368_p4), 7168   ;;  %vm1896_vm9 = vcmask (%p368_p4), 253952   ;;  %s2876_s2 = smov (%p368_p4), [#allocation32]  }
 0x251   :  { %s1904_s29 = sshll.u32 (%p368_p4), %s2876_s2, 4  ;;  %s1905_s29 = int_to_ptr.vmem [resolvable:$true] %s1904_s29 }
 0x252   :  { %s2765_s12 = scalar_lea.vmem (%p368_p4), %s1905_s29, 32  ;;  %p2770_p6 = scmp.lt.s32.totalorder (%p368_p4), %s1905_s29, %s1905_s29 }
 0x253   :  { %p2766_p5 = scmp.ne.s32.totalorder (%p368_p4), %s1905_s29, %s2765_s12  ;;  %p2771_p7 = scmp.lt.s32.totalorder (%p368_p4), %s2765_s12, %s2765_s12 }
 0x255   :  { %p2772_p8 = por (%p368_p4), %p2771_p7, %p2770_p6 }
 0x257   :  { %p2773_p9 = pnand (%p368_p4), %p2772_p8, %p2766_p5 }
 0x31d   : > { %v440_v19 = vpop.f32.mrb[0].mxu0 }
 0x31e   : > { %v441_v20 = vadd.f32 %v1956_v18, %v440_v19  ;;  %v2076_v21 = vpop.f32.mrb[1].mxu0 }
 0x31f   : > { %v443_v22 = vpop.f32.mrb[2].mxu0 }
 0x320   : > { %v3286_v23 = vpack.c.bf16 %v441_v20, %v441_v20  ;;  %v444_v24 = vadd.f32 %v1956_v18, %v443_v22  ;;  %v2077_v25 = vpop.f32.mrb[3].mxu0 }
 0x322   : > { %450 = vrot.lane.b32.xlu0 %v3286_v23, %s2861_s26  ;;  %v3289_v26 = vpack.c.bf16 %v444_v24, %v444_v24 }
 0x326   : > { %500 = vrot.lane.b32.xlu0 %v3289_v26, %s2861_s26 }
 0x394   : > { %v451_v27 = vpop.permute.xlu0 %450 }
 0x395   : > { %v457_v28 = vsel %vm452_vm4, %v451_v27, 0 }
 0x396   : > { %2079 = vmatpush3.bf16.xpose.msra.mxu1 %v457_v28 }
 0x397   : > { %2090 = vmatprep.subr.bf16.mxu1 %v2859_v14 }
 0x398   : > { %v501_v29 = vpop.permute.xlu0 %500 }
 0x399   : > { %v506_v30 = vsel %vm452_vm4, %v501_v29, 0 }
 0x39a   : > { %2085 = vmatpush3.bf16.xpose.msra.mxu0 %v506_v30 }
 0x39b   : > { %2096 = vmatprep.subr.bf16.mxu0 %v2859_v14 }
 0x39d   : > { %2081 = vmatmul.mubr.msk.bf16.vlgmr.msra.gmra.mrb[0].mxu1 %vm452_vm4, %v3286_v23 }
 0x39e   : > { %2092 = vmatprep.mubr.msk.bf16.mxu1 %vm2860_vm2, %v2859_v14 }
 0x3a1   : > { %2087 = vmatmul.mubr.msk.bf16.vlgmr.msra.gmra.mrb[4].mxu0 %vm452_vm4, %v3289_v26 }
 0x3a2   : > { %2098 = vmatprep.mubr.msk.bf16.mxu0 %vm2860_vm2, %v2859_v14 }
 0x470   : > { %v493_v31 = vpop.f32.mrb[0].mxu1 }
 0x471   : > { %v2082_v32 = vpop.f32.mrb[1].mxu1  ;;  %v548_v33 = vsel %vm452_vm4, %v493_v31, -inf }
 0x472   : > { %549 = vmax.xlane.f32.xlu1 %v548_v33  ;;  %v496_v34 = vpop.f32.mrb[2].mxu1 }
 0x473   : > { %v2083_v35 = vpop.f32.mrb[3].mxu1 }
 0x474   : > { %v542_v36 = vpop.f32.mrb[4].mxu0 }
 0x475   : > { %v2088_v37 = vpop.f32.mrb[5].mxu0  ;;  %v551_v38 = vsel %vm452_vm4, %v542_v36, -inf }
 0x476   : > { %552 = vmax.xlane.f32.xlu1 %v551_v38  ;;  %v545_v39 = vpop.f32.mrb[6].mxu0 }
 0x477   : > { %v2089_v40 = vpop.f32.mrb[7].mxu0 }
 0x487   : > { %572 = vrot.lane.b32.xlu1 %v3286_v23, %s2862_s19 }
 0x48b   : > { %621 = vrot.lane.b32.xlu1 %v3289_v26, %s2862_s19 }
 0x48f   : > { %671 = vrot.lane.b32.xlu1 %v3286_v23, %s2863_s23 }
 0x4ff   : > { %v550_v41 = vpop.xlane.xlu1 %549 }
 0x500   : > { %v554_v42 = vsub.f32 %v493_v31, %v550_v41 }
 0x502   : > { %v556_v43 = vmul.f32 1.442695, %v554_v42 }
 0x503   : > { %v553_v44 = vpop.xlane.xlu1 %552 }
 0x504   : > { %2312 = vpow2.f32 %v556_v43  ;;  %v555_v45 = vsub.f32 %v542_v36, %v553_v44 }
 0x506   : > { %v558_v46 = vmul.f32 1.442695, %v555_v45 }
 0x507   : > { %v573_v47 = vpop.permute.xlu1 %572 }
 0x508   : > { %2314 = vpow2.f32 %v558_v46  ;;  %v579_v48 = vsel %vm577_vm5, %v573_v47, 0 }
 0x509   : > { %2091 = vmatpush3.bf16.msra.mxu1 %v579_v48 }
 0x50a   : > { %2102 = vmatprep.subr.bf16.mxu1 %v2859_v14 }
 0x50b   : > { %v622_v49 = vpop.permute.xlu1 %621 }
 0x50c   : > { %v627_v50 = vsel %vm577_vm5, %v622_v49, 0 }
 0x50d   : > { %2097 = vmatpush3.bf16.msra.mxu0 %v627_v50 }
 0x50e   : > { %v2313_v51 = vpop.eup %2312  ;;  %2108 = vmatprep.subr.bf16.mxu0 %v2859_v14 }
 0x50f   : > { %v560_v52 = vsel %vm452_vm4, %v2313_v51, 0.0  ;;  %v672_v55 = vpop.permute.xlu1 %671 }
 0x510   : > { %561 = vadd.xlane.f32.xlu0 %v560_v52  ;;  %v677_v62 = vsel %vm452_vm4, %v672_v55, 0 }
 0x512   : > { %v2315_v53 = vpop.eup %2314 }
 0x513   : > { %v563_v54 = vsel %vm452_vm4, %v2315_v53, 0.0 }
 0x514   : > { %564 = vadd.xlane.f32.xlu1 %v563_v54 }
 0x525   : > { %721 = vrot.lane.b32.xlu1 %v3289_v26, %s2863_s23 }
 0x526   : > { %669 = vrot.lane.b32.xlu0 %v3286_v23, %s2864_s30 }
 0x529   : > { %719 = vrot.lane.b32.xlu1 %v3289_v26, %s2864_s30 }
 0x59d   : > { %v562_v56 = vpop.xlane.xlu0 %561 }
 0x59e   : > { %2316 = vrcp.f32 %v562_v56 }
 0x5a1   : > { %v565_v57 = vpop.xlane.xlu1 %564  ;;  %v670_v4 = vpop.permute.xlu0 %669 }
 0x5a2   : > { %2318 = vrcp.f32 %v565_v57 }
 0x5a5   : > { %v722_v0 = vpop.permute.xlu1 %721 }
 0x5a6   : > { %v727_v3 = vsel %vm452_vm4, %v722_v0, 0 }
 0x5a8   : > { %v2317_v58 = vpop.eup %2316 }
 0x5a9   : > { %v568_v59 = vmul.f32 %v2317_v58, %v2313_v51  ;;  %v720_v5 = vpop.permute.xlu1 %719 }
 0x5ab   : > { %v570_v60 = vpack.c.bf16 %v568_v59, %v568_v59 }
 0x5ac   : > { %v2319_v61 = vpop.eup %2318 }
 0x5ad   : > { %v569_v63 = vmul.f32 %v2319_v61, %v2315_v53  ;;  %2093 = vmatmul.mubr.msk.bf16.vlgmr.msra.gmra.mrb[4].mxu1 %vm452_vm4, %v570_v60 }
 0x5ae   : > { %2103 = vmatpush3.bf16.xpose.msra.mxu1 %v677_v62  ;;  %2104 = vmatprep.mubr.msk.bf16.mxu1 %vm2860_vm2, %v2859_v14 }
 0x5af   : > { %v571_v2 = vpack.c.bf16 %v569_v63, %v569_v63  ;;  %2114 = vmatprep.subr.bf16.mxu1 %v2859_v14 }
 0x5b1   : > { %2099 = vmatmul.mubr.msk.bf16.vlgmr.msra.gmra.mrb[8].mxu0 %vm452_vm4, %v571_v2 }
 0x5b2   : > { %2109 = vmatpush3.bf16.xpose.msra.mxu0 %v727_v3  ;;  %2110 = vmatprep.mubr.msk.bf16.mxu0 %vm2860_vm2, %v2859_v14 }
 0x5b3   : > { %2120 = vmatprep.subr.bf16.mxu0 %v2859_v14 }
 0x5b5   : > { %2105 = vmatmul.mubr.msk.bf16.vlgmr.msra.gmra.mrb[8].mxu1 %vm452_vm4, %v670_v4 }
 0x5b6   : > { %2116 = vmatprep.mubr.msk.bf16.mxu1 %vm2860_vm2, %v2859_v14 }
 0x5b9   : > { %2111 = vmatmul.mubr.msk.bf16.vlgmr.msra.gmra.mrb[12].mxu0 %vm452_vm4, %v720_v5 }
 0x5ba   : > { %2122 = vmatprep.mubr.msk.bf16.mxu0 %vm2860_vm2, %v2859_v14 }
 0x680   : > { %v3334_v6 = vpop.f32.mrb[4].mxu1 }
 0x681   : > { %v2094_v7 = vpop.f32.mrb[5].mxu1 }
 0x682   : > { %v618_v8 = vpop.f32.mrb[6].mxu1 }
 0x683   : > { %v2095_v10 = vpop.f32.mrb[7].mxu1 }
 0x684   : > { %v3336_v11 = vpop.f32.mrb[8].mxu0 }
 0x685   : > { %v2100_v13 = vpop.f32.mrb[9].mxu0 }
 0x686   : > { %v666_v15 = vpop.f32.mrb[10].mxu0 }
 0x687   : > { %v2101_v16 = vpop.f32.mrb[11].mxu0 }
 0x688   : > { %v713_v17 = vpop.f32.mrb[8].mxu1 }
 0x689   : > { %v2106_v18 = vpop.f32.mrb[9].mxu1  ;;  %v769_v19 = vsel %vm452_vm4, %v713_v17, -inf }
 0x68a   : > { %770 = vmax.xlane.f32.xlu1 %v769_v19  ;;  %v716_v20 = vpop.f32.mrb[10].mxu1 }
 0x68b   : > { %v2107_v21 = vpop.f32.mrb[11].mxu1 }
 0x68c   : > { %v763_v22 = vpop.f32.mrb[12].mxu0 }
 0x68d   : > { %v2112_v24 = vpop.f32.mrb[13].mxu0  ;;  %v772_v25 = vsel %vm452_vm4, %v763_v22, -inf }
 0x68e   : > { %773 = vmax.xlane.f32.xlu0 %v772_v25  ;;  %v766_v27 = vpop.f32.mrb[14].mxu0 }
 0x68f   : > { %v2113_v28 = vpop.f32.mrb[15].mxu0 }
 0x69b   : > { %793 = vrot.lane.b32.xlu1 %v3286_v23, %s2865_s1 }
 0x69f   : > { %891 = vrot.lane.b32.xlu1 %v3286_v23, %s2866_s18 }
 0x6a4   : > { %841 = vrot.lane.b32.xlu0 %v3289_v26, %s2865_s1 }
 0x6a8   : > { %889 = vrot.lane.b32.xlu0 %v3286_v23, %s2867_s25 }
 0x717   : > { %v771_v29 = vpop.xlane.xlu1 %770 }
 0x718   : > { %v775_v30 = vsub.f32 %v713_v17, %v771_v29 }
 0x71a   : > { %v777_v31 = vmul.f32 1.442695, %v775_v30 }
 0x71b   : > { %v794_v32 = vpop.permute.xlu1 %793  ;;  %v774_v33 = vpop.xlane.xlu0 %773 }
 0x71c   : > { %2320 = vpow2.f32 %v777_v31  ;;  %v799_v34 = vsel %vm577_vm5, %v794_v32, 0  ;;  %v776_v35 = vsub.f32 %v763_v22, %v774_v33 }
 0x71d   : > { %2115 = vmatpush3.bf16.msra.mxu1 %v799_v34 }
 0x71e   : > { %v779_v36 = vmul.f32 1.442695, %v776_v35  ;;  %2126 = vmatprep.subr.bf16.mxu1 %v2859_v14 }
 0x71f   : > { %v842_v37 = vpop.permute.xlu0 %841  ;;  %v892_v43 = vpop.permute.xlu1 %891 }
 0x720   : > { %2322 = vpow2.f32 %v779_v36  ;;  %v847_v38 = vsel %vm577_vm5, %v842_v37, 0  ;;  %v897_v50 = vsel %vm452_vm4, %v892_v43, 0 }
 0x721   : > { %2121 = vmatpush3.bf16.msra.mxu0 %v847_v38 }
 0x722   : > { %2132 = vmatprep.subr.bf16.mxu0 %v2859_v14 }
 0x723   : > { %v890_v55 = vpop.permute.xlu0 %889 }
 0x726   : > { %v2321_v39 = vpop.eup %2320 }
 0x727   : > { %v781_v40 = vsel %vm452_vm4, %v2321_v39, 0.0 }
 0x728   : > { %782 = vadd.xlane.f32.xlu1 %v781_v40 }
 0x72a   : > { %v2323_v41 = vpop.eup %2322 }
 0x72b   : > { %v784_v42 = vsel %vm452_vm4, %v2323_v41, 0.0 }
 0x72c   : > { %785 = vadd.xlane.f32.xlu1 %v784_v42 }
 0x73d   : > { %941 = vrot.lane.b32.xlu1 %v3289_v26, %s2866_s18 }
 0x741   : > { %939 = vrot.lane.b32.xlu1 %v3289_v26, %s2867_s25 }
 0x7b5   : > { %v783_v44 = vpop.xlane.xlu1 %782 }
 0x7b6   : > { %2324 = vrcp.f32 %v783_v44 }
 0x7b9   : > { %v786_v45 = vpop.xlane.xlu1 %785 }
 0x7ba   : > { %2326 = vrcp.f32 %v786_v45 }
 0x7bd   : > { %v942_v52 = vpop.permute.xlu1 %941 }
 0x7be   : > { %v947_v54 = vsel %vm452_vm4, %v942_v52, 0 }
 0x7c0   : > { %v2325_v46 = vpop.eup %2324 }
 0x7c1   : > { %v789_v47 = vmul.f32 %v2325_v46, %v2321_v39  ;;  %v940_v56 = vpop.permute.xlu1 %939 }
 0x7c3   : > { %v791_v48 = vpack.c.bf16 %v789_v47, %v789_v47 }
 0x7c4   : > { %v2327_v49 = vpop.eup %2326 }
 0x7c5   : > { %v790_v51 = vmul.f32 %v2327_v49, %v2323_v41  ;;  %2117 = vmatmul.mubr.msk.bf16.vlgmr.msra.gmra.mrb[12].mxu1 %vm452_vm4, %v791_v48 }
 0x7c6   : > { %2127 = vmatpush3.bf16.xpose.msra.mxu1 %v897_v50  ;;  %2128 = vmatprep.mubr.msk.bf16.mxu1 %vm2860_vm2, %v2859_v14 }
 0x7c7   : > { %v792_v53 = vpack.c.bf16 %v790_v51, %v790_v51  ;;  %2138 = vmatprep.subr.bf16.mxu1 %v2859_v14 }
 0x7c9   : > { %2123 = vmatmul.mubr.msk.bf16.vlgmr.msra.gmra.mrb[16].mxu0 %vm452_vm4, %v792_v53 }
 0x7ca   : > { %2133 = vmatpush3.bf16.xpose.msra.mxu0 %v947_v54  ;;  %2134 = vmatprep.mubr.msk.bf16.mxu0 %vm2860_vm2, %v2859_v14 }
 0x7cb   : > { %2144 = vmatprep.subr.bf16.mxu0 %v2859_v14 }
 0x7cd   : > { %2129 = vmatmul.mubr.msk.bf16.vlgmr.msra.gmra.mrb[16].mxu1 %vm452_vm4, %v890_v55 }
 0x7ce   : > { %2140 = vmatprep.mubr.msk.bf16.mxu1 %vm2860_vm2, %v2859_v14 }
 0x7d1   : > { %2135 = vmatmul.mubr.msk.bf16.vlgmr.msra.gmra.mrb[20].mxu0 %vm452_vm4, %v940_v56 }
 0x7d2   : > { %2146 = vmatprep.mubr.msk.bf16.mxu0 %vm2860_vm2, %v2859_v14 }
 0x898   : > { %v3368_v57 = vpop.f32.mrb[12].mxu1 }
 0x899   : > { %v2118_v58 = vpop.f32.mrb[13].mxu1 }
 0x89a   : > { %v838_v59 = vpop.f32.mrb[14].mxu1 }
 0x89b   : > { %v2119_v60 = vpop.f32.mrb[15].mxu1 }
 0x89c   : > { %v3370_v61 = vpop.f32.mrb[16].mxu0 }
 0x89d   : > { %v2287_v62 = vpack.i.bf16 %v3370_v61, %v3368_v57  ;;  %v2124_v63 = vpop.f32.mrb[17].mxu0 }
 0x89e   : > { %v886_v0 = vpop.f32.mrb[18].mxu0 }
 0x89f   : > { %v2125_v2 = vpop.f32.mrb[19].mxu0 }
 0x8a0   : > { %v933_v3 = vpop.f32.mrb[16].mxu1 }
 0x8a1   : > { %v2130_v4 = vpop.f32.mrb[17].mxu1  ;;  %v989_v5 = vsel %vm452_vm4, %v933_v3, -inf }
 0x8a2   : > { %990 = vmax.xlane.f32.xlu0 %v989_v5  ;;  %v936_v7 = vpop.f32.mrb[18].mxu1 }
 0x8a3   : > { %v2131_v8 = vpop.f32.mrb[19].mxu1 }
 0x8a4   : > { %v983_v10 = vpop.f32.mrb[20].mxu0 }
 0x8a5   : > { %v2136_v13 = vpop.f32.mrb[21].mxu0  ;;  %v992_v15 = vsel %vm452_vm4, %v983_v10, -inf }
 0x8a6   : > { %993 = vmax.xlane.f32.xlu1 %v992_v15  ;;  %v986_v16 = vpop.f32.mrb[22].mxu0 }
 0x8a7   : > { %v2137_v17 = vpop.f32.mrb[23].mxu0 }
 0x8b7   : > { %1013 = vrot.lane.b32.xlu1 %v3286_v23, %s2868_s6 }
 0x8bb   : > { %1111 = vrot.lane.b32.xlu1 %v3286_v23, %s2869_s14 }
 0x8bf   : > { %1161 = vrot.lane.b32.xlu1 %v3289_v26, %s2869_s14 }
 0x8c3   : > { %1159 = vrot.lane.b32.xlu1 %v3289_v26, %s2870_s10 }
 0x92f   : > { %v991_v18 = vpop.xlane.xlu0 %990 }
 0x930   : > { %v995_v19 = vsub.f32 %v933_v3, %v991_v18 }
 0x932   : > { %v997_v20 = vmul.f32 1.442695, %v995_v19 }
 0x933   : > { %v994_v21 = vpop.xlane.xlu1 %993 }
 0x934   : > { %2328 = vpow2.f32 %v997_v20  ;;  %v996_v22 = vsub.f32 %v983_v10, %v994_v21 }
 0x936   : > { %v999_v24 = vmul.f32 1.442695, %v996_v22 }
 0x937   : > { %v1014_v25 = vpop.permute.xlu1 %1013 }
 0x938   : > { %2330 = vpow2.f32 %v999_v24  ;;  %v1019_v27 = vsel %vm577_vm5, %v1014_v25, 0 }
 0x939   : > { %2139 = vmatpush3.bf16.msra.mxu1 %v1019_v27 }
 0x93a   : > { %2150 = vmatprep.subr.bf16.mxu1 %v2859_v14 }
 0x93b   : > { %v1112_v37 = vpop.permute.xlu1 %1111 }
 0x93c   : > { %v1117_v41 = vsel %vm452_vm4, %v1112_v37, 0 }
 0x93e   : > { %v2329_v28 = vpop.eup %2328 }
 0x93f   : > { %v1001_v29 = vsel %vm452_vm4, %v2329_v28, 0.0  ;;  %v1162_v43 = vpop.permute.xlu1 %1161 }
 0x940   : > { %1002 = vadd.xlane.f32.xlu0 %v1001_v29  ;;  %v1167_v45 = vsel %vm452_vm4, %v1162_v43, 0 }
 0x942   : > { %v2331_v30 = vpop.eup %2330 }
 0x943   : > { %v1004_v31 = vsel %vm452_vm4, %v2331_v30, 0.0  ;;  %v1160_v47 = vpop.permute.xlu1 %1159 }
 0x944   : > { %1005 = vadd.xlane.f32.xlu0 %v1004_v31  ;;  %v2304_v31 = vld [vmem:[%s1361_s27] sm:$0xff]  }
 0x95a   : > { %1061 = vrot.lane.b32.xlu0 %v3289_v26, %s2868_s6 }
 0x95e   : > { %1109 = vrot.lane.b32.xlu0 %v3286_v23, %s2870_s10 }
 0x9cd   : > { %v1003_v32 = vpop.xlane.xlu0 %1002 }
 0x9ce   : > { %2332 = vrcp.f32 %v1003_v32  ;;  %v2305_v32 = vld [vmem:[%s1361_s27 + $0x8] sm:$0xff]  }
 0x9d1   : > { %v1006_v33 = vpop.xlane.xlu0 %1005 }
 0x9d2   : > { %2334 = vrcp.f32 %v1006_v33 }
 0x9d5   : > { %v1062_v34 = vpop.permute.xlu0 %1061 }
 0x9d6   : > { %v1067_v35 = vsel %vm577_vm5, %v1062_v34, 0 }
 0x9d7   : > { %2145 = vmatpush3.bf16.msra.mxu0 %v1067_v35 }
 0x9d8   : > { %v2333_v36 = vpop.eup %2332  ;;  %2156 = vmatprep.subr.bf16.mxu0 %v2859_v14 }
 0x9d9   : > { %v1009_v38 = vmul.f32 %v2333_v36, %v2329_v28  ;;  %v1110_v46 = vpop.permute.xlu0 %1109 }
 0x9db   : > { %v1011_v39 = vpack.c.bf16 %v1009_v38, %v1009_v38 }
 0x9dc   : > { %v2335_v40 = vpop.eup %2334 }
 0x9dd   : > { %v1010_v42 = vmul.f32 %v2335_v40, %v2331_v30  ;;  %2141 = vmatmul.mubr.msk.bf16.vlgmr.msra.gmra.mrb[20].mxu1 %vm452_vm4, %v1011_v39 }
 0x9de   : > { %2151 = vmatpush3.bf16.xpose.msra.mxu1 %v1117_v41  ;;  %2152 = vmatprep.mubr.msk.bf16.mxu1 %vm2860_vm2, %v2859_v14 }
 0x9df   : > { %v1012_v44 = vpack.c.bf16 %v1010_v42, %v1010_v42  ;;  %2162 = vmatprep.subr.bf16.mxu1 %v2859_v14 }
 0x9e1   : > { %2147 = vmatmul.mubr.msk.bf16.vlgmr.msra.gmra.mrb[24].mxu0 %vm452_vm4, %v1012_v44 }
 0x9e2   : > { %2157 = vmatpush3.bf16.xpose.msra.mxu0 %v1167_v45  ;;  %2158 = vmatprep.mubr.msk.bf16.mxu0 %vm2860_vm2, %v2859_v14 }
 0x9e3   : > { %2168 = vmatprep.subr.bf16.mxu0 %v2859_v14 }
 0x9e5   : > { %2153 = vmatmul.mubr.msk.bf16.vlgmr.msra.gmra.mrb[24].mxu1 %vm452_vm4, %v1110_v46 }
 0x9e6   : > { %2164 = vmatprep.mubr.msk.bf16.mxu1 %vm2860_vm2, %v2859_v14 }
 0x9e9   : > { %2159 = vmatmul.mubr.msk.bf16.vlgmr.msra.gmra.mrb[28].mxu0 %vm452_vm4, %v1160_v47 }
 0x9ea   : > { %2170 = vmatprep.mubr.msk.bf16.mxu0 %vm2860_vm2, %v2859_v14 }
 0xab0   : > { %v1055_v48 = vpop.f32.mrb[20].mxu1 }
 0xab1   : > { %v2142_v49 = vpop.f32.mrb[21].mxu1 }
 0xab2   : > { %v1058_v50 = vpop.f32.mrb[22].mxu1 }
 0xab3   : > { %v2143_v51 = vpop.f32.mrb[23].mxu1 }
 0xab4   : > { %v1103_v52 = vpop.f32.mrb[24].mxu0 }
 0xab5   : > { %v2292_v53 = vpack.i.bf16 %v1103_v52, %v1055_v48  ;;  %v2148_v54 = vpop.f32.mrb[25].mxu0 }
 0xab6   : > { %v1106_v55 = vpop.f32.mrb[26].mxu0 }
 0xab7   : > { %v2149_v56 = vpop.f32.mrb[27].mxu0 }
 0xab8   : > { %v1153_v58 = vpop.f32.mrb[24].mxu1 }
 0xab9   : > { %v2154_v59 = vpop.f32.mrb[25].mxu1  ;;  %v1209_v60 = vsel %vm452_vm4, %v1153_v58, -inf }
 0xaba   : > { %1210 = vmax.xlane.f32.xlu0 %v1209_v60  ;;  %v1156_v63 = vpop.f32.mrb[26].mxu1  ;;  %v1977_v59 = vld [vmem:[%s1367_s17] ss:$0 sm:$0xff] }
 0xabb   : > { %v2155_v0 = vpop.f32.mrb[27].mxu1 }
 0xabc   : > { %v1203_v2 = vpop.f32.mrb[28].mxu0 }
 0xabd   : > { %v2160_v3 = vpop.f32.mrb[29].mxu0  ;;  %v1212_v4 = vsel %vm452_vm4, %v1203_v2, -inf }
 0xabe   : > { %1213 = vmax.xlane.f32.xlu1 %v1212_v4  ;;  %v1206_v5 = vpop.f32.mrb[30].mxu0 }
 0xabf   : > { %v2161_v7 = vpop.f32.mrb[31].mxu0 }
 0xacf   : > { %1233 = vrot.lane.b32.xlu1 %v3286_v23, %s2871_s11 }
 0xad3   : > { %2288 = vrot.lane.b32.xlu1 %v2287_v62, %s2872_s3 }
 0xad7   : > { %2293 = vrot.lane.b32.xlu1 %v2292_v53, %s2873_s7 }
 0xb47   : > { %v1211_v8 = vpop.xlane.xlu0 %1210 }
 0xb48   : > { %v1215_v10 = vsub.f32 %v1153_v58, %v1211_v8 }
 0xb4a   : > { %v1217_v13 = vmul.f32 1.442695, %v1215_v10 }
 0xb4b   : > { %v1214_v15 = vpop.xlane.xlu1 %1213 }
 0xb4c   : > { %2336 = vpow2.f32 %v1217_v13  ;;  %v1216_v16 = vsub.f32 %v1203_v2, %v1214_v15 }
 0xb4e   : > { %v1219_v17 = vmul.f32 1.442695, %v1216_v16 }
 0xb4f   : > { %v1234_v18 = vpop.permute.xlu1 %1233 }
 0xb50   : > { %2338 = vpow2.f32 %v1219_v17  ;;  %v1239_v19 = vsel %vm577_vm5, %v1234_v18, 0 }
 0xb51   : > { %2163 = vmatpush3.bf16.msra.mxu1 %v1239_v19 }
 0xb52   : > { %2174 = vmatprep.subr.bf16.mxu1 %v2859_v14 }
 0xb53   : > { %v2289_v42 = vpop.permute.xlu1 %2288 }
 0xb54   : > { %v2291_v44 = vunpack.i.h.bf16 %v2289_v42  ;;  %v2290_v45 = vunpack.i.l.bf16 %v2289_v42 }
 0xb56   : > { %v2337_v23 = vpop.eup %2336  ;;  %v1353_v49 = vsel %vm452_vm4, %v3334_v6, %v2290_v45  ;;  %v1354_v50 = vsel %vm452_vm4, %v3336_v11, %v2291_v44 }
 0xb57   : > { %v1221_v57 = vsel %vm452_vm4, %v2337_v23, 0.0  ;;  %v2294_v43 = vpop.permute.xlu1 %2293 }
 0xb58   : > { %1222 = vadd.xlane.f32.xlu0 %v1221_v57  ;;  %v2296_v46 = vunpack.i.h.bf16 %v2294_v43  ;;  %v2295_v47 = vunpack.i.l.bf16 %v2294_v43  ;;  %v2307_v57 = vld [vmem:[%s1481_s9 + $0x8] sm:$0xff]  }
 0xb5a   : > { %v2339_v61 = vpop.eup %2338  ;;  %v1355_v53 = vsel %vm321_vm1, %v1353_v49, %v2295_v47  ;;  %v1356_v54 = vsel %vm321_vm1, %v1354_v50, %v2296_v46  ;;  %v1990_v50 = vld [vmem:[%s1565_s8] ss:$0 sm:$0xff] }
 0xb5b   : > { %v1224_v62 = vsel %vm452_vm4, %v2339_v61, 0.0 }
 0xb5c   : > { %1225 = vadd.xlane.f32.xlu0 %v1224_v62  ;;  %v2309_v62 = vld [vmem:[%s3451_s5 + $0x8] sm:$0xff]  }
 0xb72   : > { %1281 = vrot.lane.b32.xlu0 %v3289_v26, %s2871_s11 }
 0xbe5   : > { %v1223_v20 = vpop.xlane.xlu0 %1222 }
 0xbe6   : > { %2340 = vrcp.f32 %v1223_v20 }
 0xbe9   : > { %v1226_v21 = vpop.xlane.xlu0 %1225 }
 0xbea   : > { %2342 = vrcp.f32 %v1226_v21 }
 0xbed   : > { %v1282_v22 = vpop.permute.xlu0 %1281 }
 0xbee   : > { %v1287_v24 = vsel %vm577_vm5, %v1282_v22, 0 }
 0xbef   : > { %2169 = vmatpush3.bf16.msra.mxu0 %v1287_v24 }
 0xbf0   : > { %v2341_v25 = vpop.eup %2340  ;;  %2182 = vmatprep.subr.bf16.mxu0 %v2859_v14 }
 0xbf1   : > { %v1229_v27 = vmul.f32 %v2341_v25, %v2337_v23  ;;  %v2306_v23 = vld [vmem:[%s1481_s9] sm:$0xff]  }
 0xbf3   : > { %v1231_v28 = vpack.c.bf16 %v1229_v27, %v1229_v27 }
 0xbf4   : > { %v2343_v29 = vpop.eup %2342 }
 0xbf5   : > { %v1230_v30 = vmul.f32 %v2343_v29, %v2339_v61  ;;  %2165 = vmatmul.mubr.msk.bf16.vlgmr.msra.gmra.mrb[28].mxu1 %vm452_vm4, %v1231_v28  ;;  %v2308_v61 = vld [vmem:[%s3451_s5] sm:$0xff]  }
 0xbf6   : > { %2178 = vmatprep.mubr.msk.bf16.mxu1 %vm2860_vm2, %v2859_v14  ;;  %2175 = vmatpush3.bf16.msra.mxu1 %v2304_v31  ;;  %v1981_v29 = vld [vmem:[%s1433_s4] ss:$0 sm:$0xff] }
 0xbf7   : > { %v1232_v26 = vpack.c.bf16 %v1230_v30, %v1230_v30  ;;  %2176 = vmatprep.subr.bf16.mxu1 %v2859_v14 }
 0xbf9   : > { %2171 = vmatmul.mubr.msk.bf16.vlgmr.msra.gmra.mrb[32].mxu0 %vm452_vm4, %v1232_v26 }
 0xbfa   : > { %2186 = vmatprep.mubr.msk.bf16.mxu0 %vm2860_vm2, %v2859_v14  ;;  %2177 = vmatpush3.bf16.msra.mxu1 %v2305_v32 }
 0xbfb   : > { %2190 = vmatprep.subr.bf16.mxu1 %v2859_v14  ;;  %2183 = vmatpush3.bf16.msra.mxu0 %v2306_v23 }
 0xbfc   : > { %2184 = vmatprep.subr.bf16.mxu0 %v2859_v14 }
 0xbff   : > { %2185 = vmatpush3.bf16.msra.mxu0 %v2307_v57  ;;  %v1997_v57 = vld [vmem:[%s1646_s28] ss:$0 sm:$0xff] }
 0xc00   :  { %2202 = vmatprep.subr.bf16.mxu0 (%p368_p4), %v2857_v1 }
 0xcc8   : > { %v1275_v33 = vpop.f32.mrb[28].mxu1 }
 0xcc9   : > { %v2166_v34 = vpop.f32.mrb[29].mxu1 }
 0xcca   : > { %v1278_v35 = vpop.f32.mrb[30].mxu1 }
 0xccb   : > { %v2167_v36 = vpop.f32.mrb[31].mxu1 }
 0xccc   : > { %v1323_v37 = vpop.f32.mrb[32].mxu0 }
 0xccd   : > { %v2297_v38 = vpack.i.bf16 %v1323_v37, %v1275_v33  ;;  %v2172_v39 = vpop.f32.mrb[33].mxu0  ;;  %v1982_v33 = vld [vmem:[%s1435_s13] ss:$0 sm:$0xff] }
 0xcce   : > { %v1326_v40 = vpop.f32.mrb[34].mxu0  ;;  %v2311_v39 = vld [vmem:[%s3451_s5 + $0x18] sm:$0xff]  }
 0xccf   : > { %2298 = vrot.lane.b32.xlu0 %v2297_v38, %s2874_s0  ;;  %v2173_v41 = vpop.f32.mrb[35].mxu0  ;;  %v2310_v38 = vld [vmem:[%s3451_s5 + $0x10] sm:$0xff]   ;;  %v1984_v40 = vld [vmem:[%s1487_s21] ss:$0 sm:$0xff] }
 0xd41   : > { %v2299_v48 = vpop.permute.xlu0 %2298 }
 0xd42   : > { %v2301_v51 = vunpack.i.h.bf16 %v2299_v48  ;;  %v2300_v52 = vunpack.i.l.bf16 %v2299_v48 }
 0xd44   : > { %v1359_v55 = vsel %vm1357_vm6, %v1356_v54, %v2301_v51  ;;  %v1358_v56 = vsel %vm1357_vm6, %v1355_v53, %v2300_v52 }
 0xd45   : > { %v1366_v58 = vpack.c.bf16 %v1359_v55, %v1358_v56 }
 0xd47   : > { %2179 = vmatmul.mubr.msk.bf16.vlgmr.msra.gmra.mrb[32].mxu1 %vm402_vm3, %v1366_v58 }
 0xd48   : > { %2198 = vmatprep.mubr.msk.bf16.mxu1 %vm2860_vm2, %v2859_v14  ;;  %2191 = vmatpush3.bf16.msra.mxu1 %v2308_v61 }
 0xd49   : > { %2192 = vmatprep.subr.bf16.mxu1 %v2859_v14 }
 0xd4c   : > { %2193 = vmatpush3.bf16.msra.mxu1 %v2309_v62 }
 0xd4d   : > { %2194 = vmatprep.subr.bf16.mxu1 %v2859_v14 }
 0xd50   : > { %2195 = vmatpush3.bf16.msra.mxu1 %v2310_v38 }
 0xd51   : > { %2196 = vmatprep.subr.bf16.mxu1 %v2859_v14 }
 0xd54   : > { %2197 = vmatpush3.bf16.msra.mxu1 %v2311_v39  ;;  %v2875_v39 = vmov (%p368_p4), 0  }
 0xd55   :  { %2210 = vmatprep.subr.bf16.mxu1 (%p368_p4), %v2857_v1  ;;  %2352 = vset.pattern.permute.xlu0 (%p368_p4), %v2875_v39 }
 0xe1a   : > { %v1424_v6 = vpop.f32.mrb[32].mxu1 }
 0xe1b   : > { %v1425_v60 = vadd.f32 %v1977_v59, %v1424_v6  ;;  %v2180_v63 = vpop.f32.mrb[33].mxu1 }
 0xe1c   : > { %v1427_v11 = vpop.f32.mrb[34].mxu1 }
 0xe1d   : > { %v1428_v0 = vadd.f32 %v1977_v59, %v1427_v11  ;;  %v2181_v2 = vpop.f32.mrb[35].mxu1  ;;  %v1431_v3 = vadd.f32 %v2827_v9, %v1425_v60 }
 0xe1f   : > { %v1437_v4 = vsel %vm402_vm3, %v1431_v3, 0.0  ;;  %v1432_v5 = vadd.f32 %v2823_v12, %v1428_v0 }
 0xe20   : > { %1438 = vadd.xlane.f32.xlu1 %v1437_v4 }
 0xe21   : > { %v1440_v7 = vsel %vm402_vm3, %v1432_v5, 0.0 }
 0xe22   : > { %1441 = vadd.xlane.f32.xlu0 %v1440_v7 }
 0xead   : > { %v1439_v8 = vpop.xlane.xlu1 %1438 }
 0xeae   : > { %v1444_v10 = vmul.f32 0.03125, %v1439_v8 }
 0xeaf   : > { %v1442_v13 = vpop.xlane.xlu0 %1441 }
 0xeb0   : > { %v1446_v15 = vsub.f32 %v1431_v3, %v1444_v10  ;;  %v1445_v16 = vmul.f32 0.03125, %v1442_v13 }
 0xeb2   : > { %v1447_v17 = vsub.f32 %v1432_v5, %v1445_v16  ;;  %v1448_v18 = vmul.f32 %v1446_v15, %v1446_v15 }
 0xeb4   : > { %v1450_v9 = vsel %vm402_vm3, %v1448_v18, 0.0  ;;  %v1449_v19 = vmul.f32 %v1447_v17, %v1447_v17 }
 0xeb5   : > { %1451 = vadd.xlane.f32.xlu0 %v1450_v9 }
 0xeb6   : > { %v1453_v12 = vsel %vm402_vm3, %v1449_v19, 0.0  ;;  %v1996_v19 = vld [vmem:[%s1644_s16] ss:$0 sm:$0xff] }
 0xeb7   : > { %1454 = vadd.xlane.f32.xlu1 %v1453_v12 }
 0xf42   : > { %v1452_v20 = vpop.xlane.xlu0 %1451 }
 0xf43   : > { %v1456_v21 = vmul.f32 0.03125, %v1452_v20 }
 0xf44   : > { %v1455_v22 = vpop.xlane.xlu1 %1454 }
 0xf45   : > { %v1458_v24 = vadd.f32 1e-05, %v1456_v21  ;;  %v1457_v25 = vmul.f32 0.03125, %v1455_v22 }
 0xf47   : > { %2344 = vrsqrt.f32 %v1458_v24  ;;  %v1459_v27 = vadd.f32 1e-05, %v1457_v25  ;;  %v2353_v24 = vld [vmem:[#allocation27] sm:$0xff] (%p368_p4)   ;;  %v2354_v25 = vld [vmem:[#allocation27 + $0x8] sm:$0xff] (%p368_p4)  }
 0xf49   : > { %2346 = vrsqrt.f32 %v1459_v27 }
 0xf51   : > { %v2345_v28 = vpop.eup %2344 }
 0xf52   : > { %v1462_v30 = vmul.f32 %v2345_v28, %v1446_v15  ;;  %v2355_v28 = vld [vmem:[#allocation30] sm:$0xff] (%p368_p4)  }
 0xf53   : > { %v2347_v26 = vpop.eup %2346 }
 0xf54   : > { %v1470_v31 = vmul.f32 %v1981_v29, %v1462_v30  ;;  %v1463_v32 = vmul.f32 %v2347_v26, %v1447_v17  ;;  %v1998_v30 = vld [vmem:[#allocation29] ss:$0 sm:$0xff] (%p368_p4) }
 0xf56   : > { %v1471_v34 = vmul.f32 %v1981_v29, %v1463_v32  ;;  %v1478_v35 = vadd.f32 %v1982_v33, %v1470_v31  ;;  %v2356_v29 = vld [vmem:[#allocation30 + $0x8] sm:$0xff] (%p368_p4)  }
 0xf58   : > { %v1479_v36 = vadd.f32 %v1982_v33, %v1471_v34 }
 0xf5a   : > { %v1486_v37 = vpack.c.bf16 %v1479_v36, %v1478_v35 }
 0xf5c   : > { %2187 = vmatmul.mubr.msk.bf16.vlgmr.msra.gmra.mrb[36].mxu0 %vm402_vm3, %v1486_v37 }
 0xf5d   :  { %2206 = vmatprep.mubr.msk.bf16.mxu0 (%p368_p4), %vm2858_vm0, %v2857_v1  ;;  %2203 = vmatpush3.bf16.msra.mxu0 (%p368_p4), %v2353_v24 }
 0xf5e   :  { %2204 = vmatprep.subr.bf16.mxu0 (%p368_p4), %v2857_v1 }
 0xf61   :  { %2205 = vmatpush3.bf16.msra.mxu0 (%p368_p4), %v2354_v25 }
0x102f   : > { %v1544_v41 = vpop.f32.mrb[36].mxu0 }
0x1030   : > { %v1545_v42 = vadd.f32 %v1984_v40, %v1544_v41  ;;  %v2188_v43 = vpop.f32.mrb[37].mxu0 }
0x1031   : > { %v1547_v44 = vpop.f32.mrb[38].mxu0 }
0x1032   : > { %v1548_v45 = vadd.f32 %v1984_v40, %v1547_v44  ;;  %v2189_v46 = vpop.f32.mrb[39].mxu0  ;;  %v1551_v47 = vmax.f32 %v1545_v42, 0.0  ;;  %v2002_v40 = vld [vmem:[#allocation2] ss:$0 sm:$0xff] (%p368_p4) }
0x1034   : > { %v1552_v48 = vmax.f32 %v1548_v45, 0.0 }
0x1036   : > { %v1564_v49 = vpack.c.bf16 %v1552_v48, %v1551_v47 }
0x1038   : > { %2199 = vmatmul.mubr.msk.bf16.vlgmr.msra.gmra.mrb[36].mxu1 %vm1597_vm7, %v1564_v49 }
0x1039   :  { %2214 = vmatprep.mubr.msk.bf16.mxu1 (%p368_p4), %vm2858_vm0, %v2857_v1  ;;  %2211 = vmatpush3.bf16.msra.mxu1 (%p368_p4), %v2355_v28 }
0x103a   :  { %2212 = vmatprep.subr.bf16.mxu1 (%p368_p4), %v2857_v1 }
0x103d   :  { %2213 = vmatpush3.bf16.msra.mxu1 (%p368_p4), %v2356_v29 }
0x110b   : > { %v1635_v51 = vpop.f32.mrb[36].mxu1 }
0x110c   : > { %v1636_v14 = vadd.f32 %v1990_v50, %v1635_v51  ;;  %v2200_v52 = vpop.f32.mrb[37].mxu1 }
0x110d   : > { %v1638_v53 = vpop.f32.mrb[38].mxu1 }
0x110e   : > { %v1639_v54 = vadd.f32 %v1990_v50, %v1638_v53  ;;  %v2201_v55 = vpop.f32.mrb[39].mxu1  ;;  %v1642_v56 = vadd.f32 %v1636_v14, %v1478_v35 }
0x1110   : > { %v1648_v58 = vsel %vm402_vm3, %v1642_v56, 0.0  ;;  %v1643_v59 = vadd.f32 %v1639_v54, %v1479_v36 }
0x1111   : > { %1649 = vadd.xlane.f32.xlu0 %v1648_v58 }
0x1112   : > { %v1651_v6 = vsel %vm402_vm3, %v1643_v59, 0.0 }
0x1113   : > { %1652 = vadd.xlane.f32.xlu1 %v1651_v6 }
0x119e   : > { %v1650_v60 = vpop.xlane.xlu0 %1649 }
0x119f   : > { %v1654_v63 = vmul.f32 0.03125, %v1650_v60 }
0x11a0   : > { %v1653_v11 = vpop.xlane.xlu1 %1652 }
0x11a1   : > { %v1656_v0 = vsub.f32 %v1642_v56, %v1654_v63  ;;  %v1655_v2 = vmul.f32 0.03125, %v1653_v11 }
0x11a3   : > { %v1657_v3 = vsub.f32 %v1643_v59, %v1655_v2  ;;  %v1658_v4 = vmul.f32 %v1656_v0, %v1656_v0 }
0x11a5   : > { %v1660_v5 = vsel %vm402_vm3, %v1658_v4, 0.0  ;;  %v1659_v7 = vmul.f32 %v1657_v3, %v1657_v3 }
0x11a6   : > { %1661 = vadd.xlane.f32.xlu0 %v1660_v5 }
0x11a7   : > { %v1663_v8 = vsel %vm402_vm3, %v1659_v7, 0.0 }
0x11a8   : > { %1664 = vadd.xlane.f32.xlu1 %v1663_v8 }
0x1233   : > { %v1662_v10 = vpop.xlane.xlu0 %1661 }
0x1234   : > { %v1666_v13 = vmul.f32 0.03125, %v1662_v10 }
0x1235   : > { %v1665_v15 = vpop.xlane.xlu1 %1664 }
0x1236   : > { %v1668_v16 = vadd.f32 1e-05, %v1666_v13  ;;  %v1667_v17 = vmul.f32 0.03125, %v1665_v15 }
0x1238   : > { %2348 = vrsqrt.f32 %v1668_v16  ;;  %v1669_v18 = vadd.f32 1e-05, %v1667_v17 }
0x123a   : > { %2350 = vrsqrt.f32 %v1669_v18 }
0x1242   : > { %v2349_v9 = vpop.eup %2348 }
0x1243   : > { %v1672_v12 = vmul.f32 %v2349_v9, %v1656_v0 }
0x1244   : > { %v2351_v23 = vpop.eup %2350 }
0x1245   : > { %v1680_v61 = vmul.f32 %v1996_v19, %v1672_v12  ;;  %v1673_v62 = vmul.f32 %v2351_v23, %v1657_v3 }
0x1246   :  { %370 = sbr.rel (!%p368_p4) target bundleno = 576 (0x240), region = 187 }
0x1247   : > { %v3471_v9 = vadd.f32 %v1997_v57, %v1680_v61   ;;  %v1681_v21 = vmul.f32 %v1996_v19, %v1673_v62 }
0x1249   : > { %v3556_v20 = vmov %v3471_v9  ;;  %v3473_v12 = vadd.f32 %v1997_v57, %v1681_v21  }
0x124a   : > { %v3559_v9 = vmov %v3556_v20 }
0x124b   : > { %v3557_v22 = vmov %v3473_v12 }
0x124c   : > { %v3558_v12 = vmov %v3557_v22  ;;  %v1694_v27 = vpack.c.bf16 (%p368_p4), %v3557_v22, %v3556_v20 }
0x124e   :  { %2207 = vmatmul.mubr.msk.bf16.vlgmr.msra.gmra.mrb[0].mxu0 %vm402_vm3, %v1694_v27 }
0x1321   :  { %v1752_v26 = vpop.f32.mrb[0].mxu0 }
0x1322   :  { %v1753_v31 = vadd.f32 %v1998_v30, %v1752_v26  ;;  %v2208_v32 = vpop.f32.mrb[1].mxu0 }
0x1323   :  { %v1755_v33 = vpop.f32.mrb[2].mxu0 }
0x1324   :  { %v1756_v34 = vadd.f32 %v1998_v30, %v1755_v33  ;;  %v2209_v35 = vpop.f32.mrb[3].mxu0  ;;  %2357 = vtanh.f32 %v1753_v31 }
0x1326   :  { %2359 = vtanh.f32 %v1756_v34 }
0x132e   :  { %v2358_v36 = vpop.eup %2357 }
0x1330   :  { %v2360_v37 = vpop.eup %2359 }
0x1331   :  { %v1765_v38 = vpack.c.bf16 %v2360_v37, %v2358_v36 }
0x1333   :  { %2215 = vmatmul.mubr.msk.bf16.vlgmr.msra.gmra.mrb[0].mxu1 %vm402_vm3, %v1765_v38 }
0x1406   :  { %v1822_v41 = vpop.f32.mrb[0].mxu1 }
0x1407   :  { %v1823_v1 = vadd.f32 %v2002_v40, %v1822_v41  ;;  %v2216_v42 = vpop.f32.mrb[1].mxu1 }
0x1408   :  { %v1825_v43 = vpop.f32.mrb[2].mxu1 }
0x1409   :  { %v1830_v44 = vsel %vm1829_vm8, %v1823_v1, -inf  ;;  %v1826_v45 = vadd.f32 %v2002_v40, %v1825_v43  ;;  %v2217_v46 = vpop.f32.mrb[3].mxu1 }
0x140a   :  { %v1831_v47 = vrot.slane %v1830_v44, 4 }
0x140b   :  { %v1837_v48 = vsel %vm1829_vm8, %v1826_v45, -inf }
0x140c   :  { %v1832_v49 = vmax.f32 %v1830_v44, %v1831_v47  ;;  %v1838_v50 = vrot.slane %v1837_v48, 4 }
0x140e   :  { %v1833_v51 = vrot.slane %v1832_v49, 2  ;;  %v1839_v14 = vmax.f32 %v1837_v48, %v1838_v50 }
0x1410   :  { %v1834_v52 = vmax.f32 %v1832_v49, %v1833_v51  ;;  %v1840_v53 = vrot.slane %v1839_v14, 2 }
0x1412   :  { %v1835_v54 = vrot.slane %v1834_v52, 1  ;;  %v1841_v55 = vmax.f32 %v1839_v14, %v1840_v53 }
0x1414   :  { %v1836_v56 = vmax.f32 %v1834_v52, %v1835_v54  ;;  %v1842_v58 = vrot.slane %v1841_v55, 1 }
0x1416   :  { %v1844_v59 = vsub.f32 %v1823_v1, %v1836_v56  ;;  %v1843_v6 = vmax.f32 %v1841_v55, %v1842_v58 }
0x1418   :  { %v1846_v60 = vmul.f32 1.442695, %v1844_v59  ;;  %v1845_v63 = vsub.f32 %v1826_v45, %v1843_v6 }
0x141a   :  { %2361 = vpow2.f32 %v1846_v60  ;;  %v1848_v11 = vmul.f32 1.442695, %v1845_v63 }
0x141c   :  { %2363 = vpow2.f32 %v1848_v11 }
0x1424   :  { %v2362_v0 = vpop.eup %2361 }
0x1425   :  { %v1850_v2 = vsel %vm1829_vm8, %v2362_v0, 0.0 }
0x1426   :  { %v2364_v3 = vpop.eup %2363  ;;  %v1851_v4 = vrot.slane %v1850_v2, 4 }
0x1427   :  { %v1857_v5 = vsel %vm1829_vm8, %v2364_v3, 0.0 }
0x1428   :  { %v1852_v7 = vadd.f32 %v1851_v4, %v1850_v2  ;;  %v1858_v8 = vrot.slane %v1857_v5, 4 }
0x142a   :  { %v1853_v10 = vrot.slane %v1852_v7, 2  ;;  %v1859_v13 = vadd.f32 %v1858_v8, %v1857_v5 }
0x142c   :  { %v1854_v15 = vadd.f32 %v1853_v10, %v1852_v7  ;;  %v1860_v16 = vrot.slane %v1859_v13, 2 }
0x142e   :  { %v1861_v17 = vadd.f32 %v1860_v16, %v1859_v13  ;;  %v1855_v18 = vrot.slane %v1854_v15, 1 }
0x1430   :  { %v1856_v9 = vadd.f32 %v1855_v18, %v1854_v15  ;;  %v1862_v19 = vrot.slane %v1861_v17, 1 }
0x1432   :  { %v1864_v12 = vadd.f32 1e-15, %v1856_v9  ;;  %v1863_v23 = vadd.f32 %v1862_v19, %v1861_v17 }
0x1434   :  { %2365 = vrcp.f32 %v1864_v12  ;;  %v1865_v57 = vadd.f32 1e-15, %v1863_v23 }
0x1436   :  { %2367 = vrcp.f32 %v1865_v57 }
0x143e   :  { %v2366_v61 = vpop.eup %2365 }
0x143f   :  { %v1868_v62 = vmul.f32 %v2366_v61, %v2362_v0 }
0x1440   :  { %v2368_v21 = vpop.eup %2367 }
0x1441   :  { %1872 = vperm.xlu0 %2352, %v1868_v62   ;;  %v1869_v24 = vmul.f32 %v2368_v21, %v2364_v3 }
0x1445   :  { %1877 = vperm.xlu0 %2352, %v1869_v24  }
0x14c0   :  { %v1873_v25 = vpop.permute.xlu0 %1872 }
0x14c1   :  { %v1880_v27 = vmul.f32 %v1873_v25, %v3556_v20 }
0x14c3   :  { %v1882_v28 = vsel %vm402_vm3, %v1880_v27, 0.0 }
0x14c4   :  { %v1883_v29 = vrot.slane %v1882_v28, 4  ;;  %v1878_v30 = vpop.permute.xlu0 %1877 }
0x14c5   :  { %v1881_v26 = vmul.f32 %v1878_v30, %v3557_v22 }
0x14c6   :  { %v1884_v31 = vadd.f32 %v1883_v29, %v1882_v28 }
0x14c7   :  { %v1889_v32 = vsel %vm402_vm3, %v1881_v26, 0.0 }
0x14c8   :  { %v1885_v33 = vrot.slane %v1884_v31, 2  ;;  %v1890_v34 = vrot.slane %v1889_v32, 4 }
0x14ca   :  { %v1886_v35 = vadd.f32 %v1885_v33, %v1884_v31  ;;  %v1891_v36 = vadd.f32 %v1890_v34, %v1889_v32 }
0x14cc   :  { %v1892_v37 = vrot.slane %v1891_v36, 2  ;;  %v1887_v38 = vrot.slane %v1886_v35, 1 }
0x14ce   :  { %v1893_v39 = vadd.f32 %v1892_v37, %v1891_v36  ;;  %v1888_v40 = vadd.f32 %v1887_v38, %v1886_v35 }
0x14d0   :  { %v1894_v20 = vrot.slane %v1893_v39, 1  ;;  %1897 = vst.msk [vmem:[#allocation32] sm:$0x1] %vm1896_vm9, %v1888_v40 }
0x14d2   :  { %v1895_v41 = vadd.f32 %v1894_v20, %v1893_v39 }
0x14d4   :  { %1898 = vst.msk [vmem:[#allocation32 + $0x1] sm:$0x1] %vm1896_vm9, %v1895_v41 }
0x14d5   :  { %2776 = shalt.err (!%p2773_p9)
}
0x14d6   :  { %s3560_s15 = sld [smem:[#allocation49_spill]] }
0x14dc   :  { %s2777_s26 = scalar_lea.hbm %s3560_s15, 32 }
0x14dd   :  { %p2778_p10 = scmp.ne.s32.totalorder %s3560_s15, %s2777_s26  ;;  %p2781_p11 = scmp.lt.u32.totalorder %s2777_s26, %s3560_s15 }
0x14df   :  { %p2783_p12 = pnand %p2781_p11, %p2778_p10 }
0x14e1   :  { %2786 = shalt.err (!%p2783_p12)
}
0x14e2   :  { %1910 = dma.vmem_to_hbm [thread:$0]  %s1905_s29, 32, %s3560_s15, [#allocation5], %s2842_s22, %s2842_s22, %s2843_s20  }
0x14e3   :  { %2819 = dma.done.wait [#allocation5], 32  }
0x14e4   :  { %2820 = vsyncadd [#allocation5], 4294967264 }
0x14e5   :  { %1914 = vsyncpa [#allocation4], 1 }
0x14e6   :  { %1915 = vsyncpa [#allocation7], 1 }
0x14e7   :  { %1916 = vsyncpa [#allocation10], 1 }
0x14e8   :  { %1917 = vsyncpa [#allocation13], 1 }
0x14e9   :  { %1918 = vsyncpa [#allocation16], 1 }
0x14ea   :  { %1919 = vsyncpa [#allocation19], 1 }
0x14eb   :  { %1920 = vsyncpa [#allocation22], 1 }
0x14ec   :  { %1921 = vsyncpa [#allocation25], 1 }
0x14ed   :  { %1922 = vsyncpa [#allocation28], 1 }
0x14ee   :  { %1923 = vsyncpa [#allocation31], 1 }
0x14ef   :  { %1924 = vsyncpa [#allocation5], 1 }

</bundles_post_ra>
